<compile_context>
chip_gen: v7x
topology: tpu7x:2x2x1
jax: 0.10.0
libtpu: 0.0.40
codegen_flags: <defaults>
</compile_context>

<pallas_src>
from functools import partial

import jax
import jax.numpy as jnp
from jax.experimental import pallas as pl
from jax.experimental.pallas import tpu as pltpu


# ----------------------------- Pallas kernels ------------------------------

def conv1_if_kernel(w_ref, b_ref, cols_ref, s_ref, spk_ref, *, T, C):
    """Conv1-as-GEMM (BN folded) + IF recurrence; GEMM shared by all T steps.

    w_ref:    [C, 9]        f32 folded weights
    b_ref:    [C, 1]        f32 folded bias (broadcast along lanes)
    cols_ref: [9, TILE]     f32 transposed im2col columns (spatial on lanes)
    s_ref:    [T*C, TILE]   bf16 spikes, sublane-packed (row = t*C + c)
    spk_ref:  [T*C, TILE]   f32 VMEM scratch (aligned per-t stores, low vreg pressure)
    """
    m = jnp.dot(w_ref[...], cols_ref[...],
                preferred_element_type=jnp.float32) + b_ref[...]
    v = jnp.zeros_like(m)
    for t in range(T):                                  # T small & static -> unrolled
        v = v + m
        spike = v >= 1.0
        spk_ref[pl.ds(t * C, C), :] = spike.astype(jnp.float32)
        v = jnp.where(spike, 0.0, v)                    # hard reset to v_reset = 0
    s_ref[...] = spk_ref[...].astype(s_ref.dtype)       # one dense bf16 store


def conv2_if_kernel(w_ref, b_ref, cols_ref, s_ref, spk_ref, *, T, C, r_stride):
    """Conv2-as-GEMM (BN folded) + IF; T time-independent GEMMs batched into ONE dot.

    w_ref:    [C, 9C]           bf16 folded weights
    b_ref:    [C, 1]            f32 folded bias
    cols_ref: [9C, T*r_stride]  bf16 columns, lanes ordered (t, r); r_stride % 128 == 0
    s_ref:    [T*C, r_stride]   bf16 spikes (row = t*C + c)
    spk_ref:  [T*C, r_stride]   f32 scratch
    """
    m_all = jnp.dot(w_ref[...], cols_ref[...],
                    preferred_element_type=jnp.float32) + b_ref[...]
    v = jnp.zeros((C, r_stride), jnp.float32)
    for t in range(T):
        v = v + m_all[:, t * r_stride:(t + 1) * r_stride]   # vreg-aligned lane slice
        spike = v >= 1.0
        spk_ref[pl.ds(t * C, C), :] = spike.astype(jnp.float32)
        v = jnp.where(spike, 0.0, v)
    s_ref[...] = spk_ref[...].astype(s_ref.dtype)


def fc_if_mean_kernel(x_ref, w1_ref, w2_ref, o_ref, *, T, N):
    """fc1 (batched over T) + IF + fc2 + IF + mean-over-T, fully fused.

    x_ref:  [T*N, C*49]  bf16 flattened spikes (t-major rows)
    w1_ref: [C*49, C*16] bf16
    w2_ref: [C*16, 10]   bf16
    o_ref:  [N, 10]      f32 firing rates
    """
    h1 = w1_ref.shape[1]
    no = w2_ref.shape[1]
    h_all = jnp.dot(x_ref[...], w1_ref[...], preferred_element_type=jnp.float32)
    v1 = jnp.zeros((N, h1), jnp.float32)
    v2 = jnp.zeros((N, no), jnp.float32)
    acc = jnp.zeros((N, no), jnp.float32)
    for t in range(T):
        v1 = v1 + h_all[t * N:(t + 1) * N, :]
        s3 = v1 >= 1.0
        v1 = jnp.where(s3, 0.0, v1)
        m2 = jnp.dot(s3.astype(w2_ref.dtype), w2_ref[...],
                     preferred_element_type=jnp.float32)   # depends on state -> per-t
        v2 = v2 + m2
        s4 = v2 >= 1.0
        v2 = jnp.where(s4, 0.0, v2)
        acc = acc + s4.astype(jnp.float32)
    o_ref[...] = acc * (1.0 / T)


# ----------------------------- kernel wrappers ------------------------------

_VMEM = pl.BlockSpec(memory_space=pltpu.MemorySpace.VMEM)


def _round_up(x, m):
    return (x + m - 1) // m * m


def _conv_compiler_params(*buf_bytes):
    # Double-buffered pipelined blocks + scratch; floor 8 MiB, cap at v7x's 64 MiB VMEM.
    need = 2 * sum(int(b) for b in buf_bytes) + (1 << 20)
    return pltpu.CompilerParams(
        dimension_semantics=("parallel",),
        vmem_limit_bytes=int(min(max(need, 8 << 20), 64 << 20)))


def _conv_if_stage1(cols, w, b, T):
    """cols [9, R] f32, w [C, 9] f32, b [C, 1] f32 -> spikes [T*C, R] bf16."""
    C = w.shape[0]
    k, r = cols.shape
    # One full-extent block when it fits (no pad/slice HBM passes, no grid-step overhead
    # on single-TC chips); otherwise 1024-lane tiles (caps live vregs in the unrolled
    # recurrence and gives the v7x 2-TC pipeline several grid steps per core).
    if r <= 2048:
        tile, n_tiles = r, 1
        cols_in = cols
    else:
        tile = 1024
        rp = _round_up(r, tile)
        n_tiles = rp // tile
        cols_in = jnp.pad(cols, ((0, 0), (0, rp - r)))
    out_w = n_tiles * tile
    cols_bytes = k * tile * 4
    out_bytes = T * C * tile * 2
    scr_bytes = T * C * tile * 4
    out = pl.pallas_call(
        partial(conv1_if_kernel, T=T, C=C),
        out_shape=jax.ShapeDtypeStruct((T * C, out_w), jnp.bfloat16),
        grid=(n_tiles,),
        in_specs=[pl.BlockSpec((C, k), lambda i: (0, 0)),
                  pl.BlockSpec((C, 1), lambda i: (0, 0)),
                  pl.BlockSpec((k, tile), lambda i: (0, i))],
        out_specs=pl.BlockSpec((T * C, tile), lambda i: (0, i)),
        scratch_shapes=[pltpu.VMEM((T * C, tile), jnp.float32)],
        compiler_params=_conv_compiler_params(cols_bytes, out_bytes, scr_bytes),
        cost_estimate=pl.CostEstimate(
            flops=int(2 * C * k * out_w + 5 * T * C * out_w),
            transcendentals=0,
            bytes_accessed=int(cols_in.size * 4 + w.size * 4 + T * C * out_w * 2)),
    )(w, b, cols_in)
    return out if out_w == r else out[:, :r]


def _conv_if_stage2(cols3d, w, b):
    """cols3d [9C, T, R] bf16 (rows ordered (cin,kh,kw)), w [C, 9C] bf16, b [C, 1] f32
    -> spikes [T*C, R] bf16."""
    C = w.shape[0]
    k, T, r = cols3d.shape
    r128 = _round_up(r, 128)
    if T * r128 <= 2048:
        tile = r128                                   # whole per-step extent in one block
    else:
        tile = max(128, min(1024, (2048 // T) // 128 * 128))
    rp = _round_up(r, tile)
    n_tiles = rp // tile
    cols_p = jnp.pad(cols3d, ((0, 0), (0, 0), (0, rp - r)))
    # Lanes ordered (r_tile, t, r_within) so each grid step gets one contiguous
    # [9C, T*tile] block and the kernel runs a SINGLE wide GEMM for all T steps.
    cols_in = (cols_p.reshape(k, T, n_tiles, tile)
               .transpose(0, 2, 1, 3)
               .reshape(k, n_tiles * T * tile))
    cols_bytes = k * T * tile * 2
    out_bytes = T * C * tile * 2
    scr_bytes = T * C * tile * 4
    out = pl.pallas_call(
        partial(conv2_if_kernel, T=T, C=C, r_stride=tile),
        out_shape=jax.ShapeDtypeStruct((T * C, rp), jnp.bfloat16),
        grid=(n_tiles,),
        in_specs=[pl.BlockSpec((C, k), lambda i: (0, 0)),
                  pl.BlockSpec((C, 1), lambda i: (0, 0)),
                  pl.BlockSpec((k, T * tile), lambda i: (0, i))],
        out_specs=pl.BlockSpec((T * C, tile), lambda i: (0, i)),
        scratch_shapes=[pltpu.VMEM((T * C, tile), jnp.float32)],
        compiler_params=_conv_compiler_params(cols_bytes, out_bytes, scr_bytes),
        cost_estimate=pl.CostEstimate(
            flops=int(2 * C * k * n_tiles * T * tile + 5 * C * n_tiles * T * tile),
            transcendentals=0,
            bytes_accessed=int(cols_in.size * 2 + w.size * 2 + T * C * rp * 2)),
    )(w, b, cols_in)
    return out if rp == r else out[:, :r]


def _fc_head(x, w1, w2, *, T, N):
    # x: [T*N, C*49] bf16 -> [N, 10] f32.  All operands are tiny; grid-less, all in VMEM.
    return pl.pallas_call(
        partial(fc_if_mean_kernel, T=T, N=N),
        out_shape=jax.ShapeDtypeStruct((N, w2.shape[1]), jnp.float32),
        in_specs=[_VMEM, _VMEM, _VMEM],
        out_specs=_VMEM,
    )(x, w1, w2)


# --------------------------------- glue -------------------------------------

@partial(jax.jit, static_argnames=("T", "channels"))
def csnn_forward(x, params, *, T, channels):
    C = channels
    N, _, H, W = x.shape
    x = x.astype(jnp.float32)

    # ---- Stage 1: Conv1(1->C, 3x3, pad 1) + BN1 (folded) + IF ----
    xi = x[:, 0]                                                   # [N, H, W]
    xpad = jnp.pad(xi, ((0, 0), (1, 1), (1, 1)))
    taps1 = [xpad[:, dh:dh + H, dw:dw + W] for dh in range(3) for dw in range(3)]
    cols1 = jnp.stack(taps1, 0).reshape(9, N * H * W)              # [9, R1], tap order (kh,kw)

    w1f = params["w1"].reshape(C, 9) * params["bn1_scale"][:, None]
    b1f = params["bn1_bias"].reshape(C, 1)
    s1 = _conv_if_stage1(cols1, w1f, b1f, T)                       # [T*C, R1] bf16
    s1 = s1.reshape(T, C, N, H, W)

    # ---- MaxPool2d(2, 2) on spikes (single fused XLA reduce) ----
    H2, W2 = H // 2, W // 2
    p1 = s1.reshape(T, C, N, H2, 2, W2, 2).max(axis=(4, 6))        # [T, C, N, 14, 14] bf16

    # ---- Stage 2: Conv2(C->C, 3x3, pad 1) + BN2 (folded) + IF ----
    p1pad = jnp.pad(p1, ((0, 0), (0, 0), (0, 0), (1, 1), (1, 1)))
    taps2 = [p1pad[:, :, :, dh:dh + H2, dw:dw + W2] for dh in range(3) for dw in range(3)]
    cols2 = jnp.stack(taps2, 2)                                    # [T, C, 9, N, H2, W2]
    cols2 = jnp.transpose(cols2, (1, 2, 0, 3, 4, 5))               # [C, 9, T, N, H2, W2]
    cols2 = cols2.reshape(C * 9, T, N * H2 * W2)                   # rows (cin,kh,kw); lanes (n,y,x)

    w2f = (params["w2"].reshape(C, C * 9)
           * params["bn2_scale"][:, None]).astype(jnp.bfloat16)
    b2f = params["bn2_bias"].reshape(C, 1)
    s2 = _conv_if_stage2(cols2, w2f, b2f)                          # [T*C, R2] bf16
    s2 = s2.reshape(T, C, N, H2, W2)

    # ---- MaxPool2d(2, 2) ----
    H3, W3 = H2 // 2, W2 // 2
    p2 = s2.reshape(T, C, N, H3, 2, W3, 2).max(axis=(4, 6))        # [T, C, N, 7, 7]

    # ---- Flatten (PyTorch channel-first (C, H, W) order) + fused FC head ----
    flat = jnp.transpose(p2, (0, 2, 1, 3, 4)).reshape(T * N, C * H3 * W3)  # t-major rows
    out = _fc_head(flat,
                   params["wfc1"].astype(jnp.bfloat16),
                   params["wfc2"].astype(jnp.bfloat16),
                   T=T, N=N)                                       # [N, 10] firing rates
    return out


def init_params(key, channels):
    C = channels
    ks = jax.random.split(key, 12)
    eps = 1e-5

    # Conv weights in PyTorch OIHW layout; Linear weights stored as [in, out].
    w1 = jax.random.normal(ks[0], (C, 1, 3, 3), jnp.float32) * (2.0 / 9.0) ** 0.5
    w2 = jax.random.normal(ks[1], (C, C, 3, 3), jnp.float32) * (2.0 / (9.0 * C)) ** 0.5
    wfc1 = jax.random.normal(ks[2], (C * 7 * 7, C * 4 * 4), jnp.float32) * (1.0 / (C * 49)) ** 0.5
    wfc2 = jax.random.normal(ks[3], (C * 4 * 4, 10), jnp.float32) * (1.0 / (C * 16)) ** 0.5

    g1 = 1.0 + 0.1 * jax.random.normal(ks[4], (C,), jnp.float32)
    b1 = 0.1 * jax.random.normal(ks[5], (C,), jnp.float32)
    m1 = 0.05 * jax.random.normal(ks[6], (C,), jnp.float32)
    v1 = 1.0 + 0.1 * jnp.abs(jax.random.normal(ks[7], (C,), jnp.float32))

    g2 = 1.0 + 0.1 * jax.random.normal(ks[8], (C,), jnp.float32)
    b2 = 0.1 * jax.random.normal(ks[9], (C,), jnp.float32)
    m2 = 0.05 * jax.random.normal(ks[10], (C,), jnp.float32)
    v2 = 1.0 + 0.1 * jnp.abs(jax.random.normal(ks[11], (C,), jnp.float32))

    bn1_scale = g1 / jnp.sqrt(v1 + eps)
    bn1_bias = b1 - m1 * bn1_scale
    bn2_scale = g2 / jnp.sqrt(v2 + eps)
    bn2_bias = b2 - m2 * bn2_scale

    return {
        "w1": w1, "w2": w2, "wfc1": wfc1, "wfc2": wfc2,
        "bn1_scale": bn1_scale, "bn1_bias": bn1_bias,
        "bn2_scale": bn2_scale, "bn2_bias": bn2_bias,
    }


if __name__ == "__main__":
    T = 4
    channels = 4
    batch = 2

    key = jax.random.PRNGKey(0)
    kx, kp = jax.random.split(key)
    # 28x28 input is required by the module's Linear(channels*7*7, ...) after two 2x2 pools.
    x = jax.random.uniform(kx, (batch, 1, 28, 28), jnp.float32)
    params = init_params(kp, channels)

    out = csnn_forward(x, params, T=T, channels=channels)
    out = jax.block_until_ready(out)

    assert out.shape == (batch, 10), out.shape
    assert bool(jnp.all(jnp.isfinite(out)))
    assert bool(jnp.all((out >= 0.0) & (out <= 1.0)))  # mean of spikes is a firing rate
    print("KERNEL_OK")
</pallas_src>

<mosaic_0001>
module attributes {stable_mosaic.version = 11 : i64} {
  func.func @conv1_if_kernel(%arg0: i32, %arg1: memref<4x9xf32, #tpu.memory_space<vmem>>, %arg2: memref<4x1xf32, #tpu.memory_space<vmem>>, %arg3: memref<9x1568xf32, #tpu.memory_space<vmem>>, %arg4: memref<16x1568xbf16, #tpu.memory_space<vmem>>, %arg5: memref<16x1568xf32, #tpu.memory_space<vmem>>) attributes {dimension_semantics = [#tpu.dimension_semantics<parallel>], iteration_bounds = array<i64: 1>, scalar_prefetch = 0 : i64, scratch_operands = 1 : i64, tpu.core_type = #tpu.core_type<tc>, window_params = [{pipeline_mode = #tpu.pipeline_mode<synchronous>, transform_indices = @transform_0, window_bounds = array<i64: 4, 9>}, {pipeline_mode = #tpu.pipeline_mode<synchronous>, transform_indices = @transform_1, window_bounds = array<i64: 4, 1>}, {transform_indices = @transform_2, window_bounds = array<i64: 9, 1568>}, {transform_indices = @transform_3, window_bounds = array<i64: 16, 1568>}]} {
    %c0 = arith.constant 0 : index
    %c0_0 = arith.constant 0 : index
    %0 = vector.load %arg1[%c0, %c0_0] : memref<4x9xf32, #tpu.memory_space<vmem>>, vector<4x9xf32>
    %c0_1 = arith.constant 0 : index
    %c0_2 = arith.constant 0 : index
    %1 = vector.load %arg3[%c0_1, %c0_2] : memref<9x1568xf32, #tpu.memory_space<vmem>>, vector<9x1568xf32>
    %cst = arith.constant dense<0.000000e+00> : vector<4x1568xf32>
    %2 = tpu.matmul %0, %1, %cst {dimension_numbers = #tpu.dot_dimension_numbers<[1], [0], [0], [1], [0, 0, 1, 1], [], []>} : vector<4x9xf32>, vector<9x1568xf32>, vector<4x1568xf32> -> vector<4x1568xf32>
    %c0_3 = arith.constant 0 : index
    %c0_4 = arith.constant 0 : index
    %3 = vector.load %arg2[%c0_3, %c0_4] : memref<4x1xf32, #tpu.memory_space<vmem>>, vector<4x1xf32>
    %4 = vector.broadcast %3 : vector<4x1xf32> to vector<4x1568xf32>
    %5 = arith.addf %2, %4 : vector<4x1568xf32>
    %cst_5 = arith.constant 0.000000e+00 : f32
    %6 = vector.broadcast %cst_5 : f32 to vector<4x1568xf32>
    %7 = arith.addf %6, %5 : vector<4x1568xf32>
    %cst_6 = arith.constant 1.000000e+00 : f32
    %8 = vector.broadcast %cst_6 : f32 to vector<4x1568xf32>
    %9 = arith.cmpf oge, %7, %8 : vector<4x1568xf32>
    %10 = arith.extui %9 : vector<4x1568xi1> to vector<4x1568xi32>
    %11 = arith.sitofp %10 : vector<4x1568xi32> to vector<4x1568xf32>
    %c0_7 = arith.constant 0 : index
    %c0_8 = arith.constant 0 : index
    %12 = vector.load %arg5[%c0_7, %c0_8] : memref<16x1568xf32, #tpu.memory_space<vmem>>, vector<4x1568xf32>
    tpu.vector_store %arg5[%c0_7, %c0_8], %11 {strides = array<i32>} : memref<16x1568xf32, #tpu.memory_space<vmem>>, vector<4x1568xf32>,
    %cst_9 = arith.constant 0.000000e+00 : f32
    %13 = vector.broadcast %cst_9 : f32 to vector<4x1568xf32>
    %14 = arith.select %9, %13, %7 : vector<4x1568xi1>, vector<4x1568xf32>
    %15 = arith.addf %14, %5 : vector<4x1568xf32>
    %cst_10 = arith.constant 1.000000e+00 : f32
    %16 = vector.broadcast %cst_10 : f32 to vector<4x1568xf32>
    %17 = arith.cmpf oge, %15, %16 : vector<4x1568xf32>
    %18 = arith.extui %17 : vector<4x1568xi1> to vector<4x1568xi32>
    %19 = arith.sitofp %18 : vector<4x1568xi32> to vector<4x1568xf32>
    %c4 = arith.constant 4 : index
    %c0_11 = arith.constant 0 : index
    %20 = vector.load %arg5[%c4, %c0_11] : memref<16x1568xf32, #tpu.memory_space<vmem>>, vector<4x1568xf32>
    tpu.vector_store %arg5[%c4, %c0_11], %19 {strides = array<i32>} : memref<16x1568xf32, #tpu.memory_space<vmem>>, vector<4x1568xf32>,
    %cst_12 = arith.constant 0.000000e+00 : f32
    %21 = vector.broadcast %cst_12 : f32 to vector<4x1568xf32>
    %22 = arith.select %17, %21, %15 : vector<4x1568xi1>, vector<4x1568xf32>
    %23 = arith.addf %22, %5 : vector<4x1568xf32>
    %cst_13 = arith.constant 1.000000e+00 : f32
    %24 = vector.broadcast %cst_13 : f32 to vector<4x1568xf32>
    %25 = arith.cmpf oge, %23, %24 : vector<4x1568xf32>
    %26 = arith.extui %25 : vector<4x1568xi1> to vector<4x1568xi32>
    %27 = arith.sitofp %26 : vector<4x1568xi32> to vector<4x1568xf32>
    %c8 = arith.constant 8 : index
    %c0_14 = arith.constant 0 : index
    %28 = vector.load %arg5[%c8, %c0_14] : memref<16x1568xf32, #tpu.memory_space<vmem>>, vector<4x1568xf32>
    tpu.vector_store %arg5[%c8, %c0_14], %27 {strides = array<i32>} : memref<16x1568xf32, #tpu.memory_space<vmem>>, vector<4x1568xf32>,
    %cst_15 = arith.constant 0.000000e+00 : f32
    %29 = vector.broadcast %cst_15 : f32 to vector<4x1568xf32>
    %30 = arith.select %25, %29, %23 : vector<4x1568xi1>, vector<4x1568xf32>
    %31 = arith.addf %30, %5 : vector<4x1568xf32>
    %cst_16 = arith.constant 1.000000e+00 : f32
    %32 = vector.broadcast %cst_16 : f32 to vector<4x1568xf32>
    %33 = arith.cmpf oge, %31, %32 : vector<4x1568xf32>
    %34 = arith.extui %33 : vector<4x1568xi1> to vector<4x1568xi32>
    %35 = arith.sitofp %34 : vector<4x1568xi32> to vector<4x1568xf32>
    %c12 = arith.constant 12 : index
    %c0_17 = arith.constant 0 : index
    %36 = vector.load %arg5[%c12, %c0_17] : memref<16x1568xf32, #tpu.memory_space<vmem>>, vector<4x1568xf32>
    tpu.vector_store %arg5[%c12, %c0_17], %35 {strides = array<i32>} : memref<16x1568xf32, #tpu.memory_space<vmem>>, vector<4x1568xf32>,
    %c0_18 = arith.constant 0 : index
    %c0_19 = arith.constant 0 : index
    %37 = vector.load %arg5[%c0_18, %c0_19] : memref<16x1568xf32, #tpu.memory_space<vmem>>, vector<16x1568xf32>
    %38 = arith.truncf %37 : vector<16x1568xf32> to vector<16x1568xbf16>
    %c0_20 = arith.constant 0 : index
    %c0_21 = arith.constant 0 : index
    %39 = vector.load %arg4[%c0_20, %c0_21] : memref<16x1568xbf16, #tpu.memory_space<vmem>>, vector<16x1568xbf16>
    tpu.vector_store %arg4[%c0_20, %c0_21], %38 {strides = array<i32>} : memref<16x1568xbf16, #tpu.memory_space<vmem>>, vector<16x1568xbf16>,
    return
  }
  func.func @transform_0(%arg0: i32) -> (i32, i32) {
    %c0_i32 = arith.constant 0 : i32
    %c0_i32_0 = arith.constant 0 : i32
    %c0_i32_1 = arith.constant 0 : i32
    return %c0_i32, %c0_i32_0 : i32, i32
  }
  func.func @transform_1(%arg0: i32) -> (i32, i32) {
    %c0_i32 = arith.constant 0 : i32
    %c0_i32_0 = arith.constant 0 : i32
    %c0_i32_1 = arith.constant 0 : i32
    return %c0_i32, %c0_i32_0 : i32, i32
  }
  func.func @transform_2(%arg0: i32) -> (i32, i32) {
    %c0_i32 = arith.constant 0 : i32
    %c0_i32_0 = arith.constant 0 : i32
    return %c0_i32, %arg0 : i32, i32
  }
  func.func @transform_3(%arg0: i32) -> (i32, i32) {
    %c0_i32 = arith.constant 0 : i32
    %c0_i32_0 = arith.constant 0 : i32
    return %c0_i32, %arg0 : i32, i32
  }
}

module attributes {stable_mosaic.version = 11 : i64} {
  func.func @conv2_if_kernel(%arg0: i32, %arg1: memref<4x36xbf16, #tpu.memory_space<vmem>>, %arg2: memref<4x1xf32, #tpu.memory_space<vmem>>, %arg3: memref<36x2048xbf16, #tpu.memory_space<vmem>>, %arg4: memref<16x512xbf16, #tpu.memory_space<vmem>>, %arg5: memref<16x512xf32, #tpu.memory_space<vmem>>) attributes {dimension_semantics = [#tpu.dimension_semantics<parallel>], iteration_bounds = array<i64: 1>, scalar_prefetch = 0 : i64, scratch_operands = 1 : i64, tpu.core_type = #tpu.core_type<tc>, window_params = [{pipeline_mode = #tpu.pipeline_mode<synchronous>, transform_indices = @transform_0, window_bounds = array<i64: 4, 36>}, {pipeline_mode = #tpu.pipeline_mode<synchronous>, transform_indices = @transform_1, window_bounds = array<i64: 4, 1>}, {transform_indices = @transform_2, window_bounds = array<i64: 36, 2048>}, {transform_indices = @transform_3, window_bounds = array<i64: 16, 512>}]} {
    %c0 = arith.constant 0 : index
    %c0_0 = arith.constant 0 : index
    %0 = vector.load %arg1[%c0, %c0_0] : memref<4x36xbf16, #tpu.memory_space<vmem>>, vector<4x36xbf16>
    %c0_1 = arith.constant 0 : index
    %c0_2 = arith.constant 0 : index
    %1 = vector.load %arg3[%c0_1, %c0_2] : memref<36x2048xbf16, #tpu.memory_space<vmem>>, vector<36x2048xbf16>
    %cst = arith.constant dense<0.000000e+00> : vector<4x2048xf32>
    %2 = tpu.matmul %0, %1, %cst {dimension_numbers = #tpu.dot_dimension_numbers<[1], [0], [0], [1], [0, 0, 1, 1], [], []>} : vector<4x36xbf16>, vector<36x2048xbf16>, vector<4x2048xf32> -> vector<4x2048xf32>
    %c0_3 = arith.constant 0 : index
    %c0_4 = arith.constant 0 : index
    %3 = vector.load %arg2[%c0_3, %c0_4] : memref<4x1xf32, #tpu.memory_space<vmem>>, vector<4x1xf32>
    %4 = vector.broadcast %3 : vector<4x1xf32> to vector<4x2048xf32>
    %5 = arith.addf %2, %4 : vector<4x2048xf32>
    %cst_5 = arith.constant 0.000000e+00 : f32
    %6 = vector.broadcast %cst_5 : f32 to vector<4x512xf32>
    %7 = vector.extract_strided_slice %5 {offsets = [0, 0], sizes = [4, 512], strides = [1, 1]} : vector<4x2048xf32> to vector<4x512xf32>
    %8 = arith.addf %6, %7 : vector<4x512xf32>
    %cst_6 = arith.constant 1.000000e+00 : f32
    %9 = vector.broadcast %cst_6 : f32 to vector<4x512xf32>
    %10 = arith.cmpf oge, %8, %9 : vector<4x512xf32>
    %11 = arith.extui %10 : vector<4x512xi1> to vector<4x512xi32>
    %12 = arith.sitofp %11 : vector<4x512xi32> to vector<4x512xf32>
    %c0_7 = arith.constant 0 : index
    %c0_8 = arith.constant 0 : index
    %13 = vector.load %arg5[%c0_7, %c0_8] : memref<16x512xf32, #tpu.memory_space<vmem>>, vector<4x512xf32>
    tpu.vector_store %arg5[%c0_7, %c0_8], %12 {strides = array<i32>} : memref<16x512xf32, #tpu.memory_space<vmem>>, vector<4x512xf32>,
    %cst_9 = arith.constant 0.000000e+00 : f32
    %14 = vector.broadcast %cst_9 : f32 to vector<4x512xf32>
    %15 = arith.select %10, %14, %8 : vector<4x512xi1>, vector<4x512xf32>
    %16 = vector.extract_strided_slice %5 {offsets = [0, 512], sizes = [4, 512], strides = [1, 1]} : vector<4x2048xf32> to vector<4x512xf32>
    %17 = arith.addf %15, %16 : vector<4x512xf32>
    %cst_10 = arith.constant 1.000000e+00 : f32
    %18 = vector.broadcast %cst_10 : f32 to vector<4x512xf32>
    %19 = arith.cmpf oge, %17, %18 : vector<4x512xf32>
    %20 = arith.extui %19 : vector<4x512xi1> to vector<4x512xi32>
    %21 = arith.sitofp %20 : vector<4x512xi32> to vector<4x512xf32>
    %c4 = arith.constant 4 : index
    %c0_11 = arith.constant 0 : index
    %22 = vector.load %arg5[%c4, %c0_11] : memref<16x512xf32, #tpu.memory_space<vmem>>, vector<4x512xf32>
    tpu.vector_store %arg5[%c4, %c0_11], %21 {strides = array<i32>} : memref<16x512xf32, #tpu.memory_space<vmem>>, vector<4x512xf32>,
    %cst_12 = arith.constant 0.000000e+00 : f32
    %23 = vector.broadcast %cst_12 : f32 to vector<4x512xf32>
    %24 = arith.select %19, %23, %17 : vector<4x512xi1>, vector<4x512xf32>
    %25 = vector.extract_strided_slice %5 {offsets = [0, 1024], sizes = [4, 512], strides = [1, 1]} : vector<4x2048xf32> to vector<4x512xf32>
    %26 = arith.addf %24, %25 : vector<4x512xf32>
    %cst_13 = arith.constant 1.000000e+00 : f32
    %27 = vector.broadcast %cst_13 : f32 to vector<4x512xf32>
    %28 = arith.cmpf oge, %26, %27 : vector<4x512xf32>
    %29 = arith.extui %28 : vector<4x512xi1> to vector<4x512xi32>
    %30 = arith.sitofp %29 : vector<4x512xi32> to vector<4x512xf32>
    %c8 = arith.constant 8 : index
    %c0_14 = arith.constant 0 : index
    %31 = vector.load %arg5[%c8, %c0_14] : memref<16x512xf32, #tpu.memory_space<vmem>>, vector<4x512xf32>
    tpu.vector_store %arg5[%c8, %c0_14], %30 {strides = array<i32>} : memref<16x512xf32, #tpu.memory_space<vmem>>, vector<4x512xf32>,
    %cst_15 = arith.constant 0.000000e+00 : f32
    %32 = vector.broadcast %cst_15 : f32 to vector<4x512xf32>
    %33 = arith.select %28, %32, %26 : vector<4x512xi1>, vector<4x512xf32>
    %34 = vector.extract_strided_slice %5 {offsets = [0, 1536], sizes = [4, 512], strides = [1, 1]} : vector<4x2048xf32> to vector<4x512xf32>
    %35 = arith.addf %33, %34 : vector<4x512xf32>
    %cst_16 = arith.constant 1.000000e+00 : f32
    %36 = vector.broadcast %cst_16 : f32 to vector<4x512xf32>
    %37 = arith.cmpf oge, %35, %36 : vector<4x512xf32>
    %38 = arith.extui %37 : vector<4x512xi1> to vector<4x512xi32>
    %39 = arith.sitofp %38 : vector<4x512xi32> to vector<4x512xf32>
    %c12 = arith.constant 12 : index
    %c0_17 = arith.constant 0 : index
    %40 = vector.load %arg5[%c12, %c0_17] : memref<16x512xf32, #tpu.memory_space<vmem>>, vector<4x512xf32>
    tpu.vector_store %arg5[%c12, %c0_17], %39 {strides = array<i32>} : memref<16x512xf32, #tpu.memory_space<vmem>>, vector<4x512xf32>,
    %c0_18 = arith.constant 0 : index
    %c0_19 = arith.constant 0 : index
    %41 = vector.load %arg5[%c0_18, %c0_19] : memref<16x512xf32, #tpu.memory_space<vmem>>, vector<16x512xf32>
    %42 = arith.truncf %41 : vector<16x512xf32> to vector<16x512xbf16>
    %c0_20 = arith.constant 0 : index
    %c0_21 = arith.constant 0 : index
    %43 = vector.load %arg4[%c0_20, %c0_21] : memref<16x512xbf16, #tpu.memory_space<vmem>>, vector<16x512xbf16>
    tpu.vector_store %arg4[%c0_20, %c0_21], %42 {strides = array<i32>} : memref<16x512xbf16, #tpu.memory_space<vmem>>, vector<16x512xbf16>,
    return
  }
  func.func @transform_0(%arg0: i32) -> (i32, i32) {
    %c0_i32 = arith.constant 0 : i32
    %c0_i32_0 = arith.constant 0 : i32
    %c0_i32_1 = arith.constant 0 : i32
    return %c0_i32, %c0_i32_0 : i32, i32
  }
  func.func @transform_1(%arg0: i32) -> (i32, i32) {
    %c0_i32 = arith.constant 0 : i32
    %c0_i32_0 = arith.constant 0 : i32
    %c0_i32_1 = arith.constant 0 : i32
    return %c0_i32, %c0_i32_0 : i32, i32
  }
  func.func @transform_2(%arg0: i32) -> (i32, i32) {
    %c0_i32 = arith.constant 0 : i32
    %c0_i32_0 = arith.constant 0 : i32
    return %c0_i32, %arg0 : i32, i32
  }
  func.func @transform_3(%arg0: i32) -> (i32, i32) {
    %c0_i32 = arith.constant 0 : i32
    %c0_i32_0 = arith.constant 0 : i32
    return %c0_i32, %arg0 : i32, i32
  }
}

module attributes {stable_mosaic.version = 11 : i64} {
  func.func @fc_if_mean_kernel(%arg0: memref<8x196xbf16, #tpu.memory_space<vmem>>, %arg1: memref<196x64xbf16, #tpu.memory_space<vmem>>, %arg2: memref<64x10xbf16, #tpu.memory_space<vmem>>, %arg3: memref<2x10xf32, #tpu.memory_space<vmem>>) attributes {dimension_semantics = [], scalar_prefetch = 0 : i64, scratch_operands = 0 : i64, tpu.core_type = #tpu.core_type<tc>} {
    %c0 = arith.constant 0 : index
    %c0_0 = arith.constant 0 : index
    %0 = vector.load %arg0[%c0, %c0_0] : memref<8x196xbf16, #tpu.memory_space<vmem>>, vector<8x196xbf16>
    %c0_1 = arith.constant 0 : index
    %c0_2 = arith.constant 0 : index
    %1 = vector.load %arg1[%c0_1, %c0_2] : memref<196x64xbf16, #tpu.memory_space<vmem>>, vector<196x64xbf16>
    %cst = arith.constant dense<0.000000e+00> : vector<8x64xf32>
    %2 = tpu.matmul %0, %1, %cst {dimension_numbers = #tpu.dot_dimension_numbers<[1], [0], [0], [1], [0, 0, 1, 1], [], []>} : vector<8x196xbf16>, vector<196x64xbf16>, vector<8x64xf32> -> vector<8x64xf32>
    %cst_3 = arith.constant 0.000000e+00 : f32
    %3 = vector.broadcast %cst_3 : f32 to vector<2x64xf32>
    %cst_4 = arith.constant 0.000000e+00 : f32
    %4 = vector.broadcast %cst_4 : f32 to vector<2x10xf32>
    %cst_5 = arith.constant 0.000000e+00 : f32
    %5 = vector.broadcast %cst_5 : f32 to vector<2x10xf32>
    %6 = vector.extract_strided_slice %2 {offsets = [0, 0], sizes = [2, 64], strides = [1, 1]} : vector<8x64xf32> to vector<2x64xf32>
    %7 = arith.addf %3, %6 : vector<2x64xf32>
    %cst_6 = arith.constant 1.000000e+00 : f32
    %8 = vector.broadcast %cst_6 : f32 to vector<2x64xf32>
    %9 = arith.cmpf oge, %7, %8 : vector<2x64xf32>
    %cst_7 = arith.constant 0.000000e+00 : f32
    %10 = vector.broadcast %cst_7 : f32 to vector<2x64xf32>
    %11 = arith.select %9, %10, %7 : vector<2x64xi1>, vector<2x64xf32>
    %12 = arith.extui %9 : vector<2x64xi1> to vector<2x64xi32>
    %13 = arith.sitofp %12 : vector<2x64xi32> to vector<2x64xf32>
    %14 = arith.truncf %13 : vector<2x64xf32> to vector<2x64xbf16>
    %c0_8 = arith.constant 0 : index
    %c0_9 = arith.constant 0 : index
    %15 = vector.load %arg2[%c0_8, %c0_9] : memref<64x10xbf16, #tpu.memory_space<vmem>>, vector<64x10xbf16>
    %cst_10 = arith.constant dense<0.000000e+00> : vector<2x10xf32>
    %16 = tpu.matmul %14, %15, %cst_10 {dimension_numbers = #tpu.dot_dimension_numbers<[1], [0], [0], [1], [0, 0, 1, 1], [], []>} : vector<2x64xbf16>, vector<64x10xbf16>, vector<2x10xf32> -> vector<2x10xf32>
    %17 = arith.addf %4, %16 : vector<2x10xf32>
    %cst_11 = arith.constant 1.000000e+00 : f32
    %18 = vector.broadcast %cst_11 : f32 to vector<2x10xf32>
    %19 = arith.cmpf oge, %17, %18 : vector<2x10xf32>
    %cst_12 = arith.constant 0.000000e+00 : f32
    %20 = vector.broadcast %cst_12 : f32 to vector<2x10xf32>
    %21 = arith.select %19, %20, %17 : vector<2x10xi1>, vector<2x10xf32>
    %22 = arith.extui %19 : vector<2x10xi1> to vector<2x10xi32>
    %23 = arith.sitofp %22 : vector<2x10xi32> to vector<2x10xf32>
    %24 = arith.addf %5, %23 : vector<2x10xf32>
    %25 = vector.extract_strided_slice %2 {offsets = [2, 0], sizes = [2, 64], strides = [1, 1]} : vector<8x64xf32> to vector<2x64xf32>
    %26 = arith.addf %11, %25 : vector<2x64xf32>
    %cst_13 = arith.constant 1.000000e+00 : f32
    %27 = vector.broadcast %cst_13 : f32 to vector<2x64xf32>
    %28 = arith.cmpf oge, %26, %27 : vector<2x64xf32>
    %cst_14 = arith.constant 0.000000e+00 : f32
    %29 = vector.broadcast %cst_14 : f32 to vector<2x64xf32>
    %30 = arith.select %28, %29, %26 : vector<2x64xi1>, vector<2x64xf32>
    %31 = arith.extui %28 : vector<2x64xi1> to vector<2x64xi32>
    %32 = arith.sitofp %31 : vector<2x64xi32> to vector<2x64xf32>
    %33 = arith.truncf %32 : vector<2x64xf32> to vector<2x64xbf16>
    %c0_15 = arith.constant 0 : index
    %c0_16 = arith.constant 0 : index
    %34 = vector.load %arg2[%c0_15, %c0_16] : memref<64x10xbf16, #tpu.memory_space<vmem>>, vector<64x10xbf16>
    %cst_17 = arith.constant dense<0.000000e+00> : vector<2x10xf32>
    %35 = tpu.matmul %33, %34, %cst_17 {dimension_numbers = #tpu.dot_dimension_numbers<[1], [0], [0], [1], [0, 0, 1, 1], [], []>} : vector<2x64xbf16>, vector<64x10xbf16>, vector<2x10xf32> -> vector<2x10xf32>
    %36 = arith.addf %21, %35 : vector<2x10xf32>
    %cst_18 = arith.constant 1.000000e+00 : f32
    %37 = vector.broadcast %cst_18 : f32 to vector<2x10xf32>
    %38 = arith.cmpf oge, %36, %37 : vector<2x10xf32>
    %cst_19 = arith.constant 0.000000e+00 : f32
    %39 = vector.broadcast %cst_19 : f32 to vector<2x10xf32>
    %40 = arith.select %38, %39, %36 : vector<2x10xi1>, vector<2x10xf32>
    %41 = arith.extui %38 : vector<2x10xi1> to vector<2x10xi32>
    %42 = arith.sitofp %41 : vector<2x10xi32> to vector<2x10xf32>
    %43 = arith.addf %24, %42 : vector<2x10xf32>
    %44 = vector.extract_strided_slice %2 {offsets = [4, 0], sizes = [2, 64], strides = [1, 1]} : vector<8x64xf32> to vector<2x64xf32>
    %45 = arith.addf %30, %44 : vector<2x64xf32>
    %cst_20 = arith.constant 1.000000e+00 : f32
    %46 = vector.broadcast %cst_20 : f32 to vector<2x64xf32>
    %47 = arith.cmpf oge, %45, %46 : vector<2x64xf32>
    %cst_21 = arith.constant 0.000000e+00 : f32
    %48 = vector.broadcast %cst_21 : f32 to vector<2x64xf32>
    %49 = arith.select %47, %48, %45 : vector<2x64xi1>, vector<2x64xf32>
    %50 = arith.extui %47 : vector<2x64xi1> to vector<2x64xi32>
    %51 = arith.sitofp %50 : vector<2x64xi32> to vector<2x64xf32>
    %52 = arith.truncf %51 : vector<2x64xf32> to vector<2x64xbf16>
    %c0_22 = arith.constant 0 : index
    %c0_23 = arith.constant 0 : index
    %53 = vector.load %arg2[%c0_22, %c0_23] : memref<64x10xbf16, #tpu.memory_space<vmem>>, vector<64x10xbf16>
    %cst_24 = arith.constant dense<0.000000e+00> : vector<2x10xf32>
    %54 = tpu.matmul %52, %53, %cst_24 {dimension_numbers = #tpu.dot_dimension_numbers<[1], [0], [0], [1], [0, 0, 1, 1], [], []>} : vector<2x64xbf16>, vector<64x10xbf16>, vector<2x10xf32> -> vector<2x10xf32>
    %55 = arith.addf %40, %54 : vector<2x10xf32>
    %cst_25 = arith.constant 1.000000e+00 : f32
    %56 = vector.broadcast %cst_25 : f32 to vector<2x10xf32>
    %57 = arith.cmpf oge, %55, %56 : vector<2x10xf32>
    %cst_26 = arith.constant 0.000000e+00 : f32
    %58 = vector.broadcast %cst_26 : f32 to vector<2x10xf32>
    %59 = arith.select %57, %58, %55 : vector<2x10xi1>, vector<2x10xf32>
    %60 = arith.extui %57 : vector<2x10xi1> to vector<2x10xi32>
    %61 = arith.sitofp %60 : vector<2x10xi32> to vector<2x10xf32>
    %62 = arith.addf %43, %61 : vector<2x10xf32>
    %63 = vector.extract_strided_slice %2 {offsets = [6, 0], sizes = [2, 64], strides = [1, 1]} : vector<8x64xf32> to vector<2x64xf32>
    %64 = arith.addf %49, %63 : vector<2x64xf32>
    %cst_27 = arith.constant 1.000000e+00 : f32
    %65 = vector.broadcast %cst_27 : f32 to vector<2x64xf32>
    %66 = arith.cmpf oge, %64, %65 : vector<2x64xf32>
    %67 = arith.extui %66 : vector<2x64xi1> to vector<2x64xi32>
    %68 = arith.sitofp %67 : vector<2x64xi32> to vector<2x64xf32>
    %69 = arith.truncf %68 : vector<2x64xf32> to vector<2x64xbf16>
    %c0_28 = arith.constant 0 : index
    %c0_29 = arith.constant 0 : index
    %70 = vector.load %arg2[%c0_28, %c0_29] : memref<64x10xbf16, #tpu.memory_space<vmem>>, vector<64x10xbf16>
    %cst_30 = arith.constant dense<0.000000e+00> : vector<2x10xf32>
    %71 = tpu.matmul %69, %70, %cst_30 {dimension_numbers = #tpu.dot_dimension_numbers<[1], [0], [0], [1], [0, 0, 1, 1], [], []>} : vector<2x64xbf16>, vector<64x10xbf16>, vector<2x10xf32> -> vector<2x10xf32>
    %72 = arith.addf %59, %71 : vector<2x10xf32>
    %cst_31 = arith.constant 1.000000e+00 : f32
    %73 = vector.broadcast %cst_31 : f32 to vector<2x10xf32>
    %74 = arith.cmpf oge, %72, %73 : vector<2x10xf32>
    %75 = arith.extui %74 : vector<2x10xi1> to vector<2x10xi32>
    %76 = arith.sitofp %75 : vector<2x10xi32> to vector<2x10xf32>
    %77 = arith.addf %62, %76 : vector<2x10xf32>
    %cst_32 = arith.constant 2.500000e-01 : f32
    %78 = vector.broadcast %cst_32 : f32 to vector<2x10xf32>
    %79 = arith.mulf %77, %78 : vector<2x10xf32>
    %c0_33 = arith.constant 0 : index
    %c0_34 = arith.constant 0 : index
    %80 = vector.load %arg3[%c0_33, %c0_34] : memref<2x10xf32, #tpu.memory_space<vmem>>, vector<2x10xf32>
    tpu.vector_store %arg3[%c0_33, %c0_34], %79 {strides = array<i32>} : memref<2x10xf32, #tpu.memory_space<vmem>>, vector<2x10xf32>,
    return
  }
}

</mosaic_0001>

<bundles_post_ra>
// kernel: csnn_forward.3
= control target key start
LH: loop header
LB: loop body
LE: loop exit
PB: predicated region body
PF: predicated region fallthrough
CT: control target
= control target key end

     0   :  { %vm51_vm0 = vcmask 1040384   ;;  %vm1246_vm1 = vmmov 1   ;;  %v1247_v3 = vmov 0.0   ;;  %v1248_v8 = vmov 0   ;;  %s1623_s2 = inlined_call_operand.vmem [shape: f32[9,1568], index: 2, kind: input, shape index: {}]   ;;  %s1624_s0 = inlined_call_operand.vmem [shape: f32[4,9], index: 0, kind: input, shape index: {}]   ;;  %s1625_s1 = inlined_call_operand.vmem [shape: f32[4,1], index: 1, kind: input, shape index: {}]   ;;  %s1626_s3 = inlined_call_operand.vmem [shape: bf16[16,1568], index: 3, kind: output, shape index: {}]  }
   0x1   :  { %v16_v0 = vld [vmem:[%s1623_s2 + $0x8] sm:$0xff]  ;;  %v29_v1 = vld [vmem:[%s1623_s2 + $0x70] sm:$0x1]  ;;  %vm1277_vm2 = vmpackc.low %vm51_vm0, %vm1246_vm1  ;;  %155 = vmatprep.mubr.f32.mxu0 %v1247_v3  ;;  %226 = vmatprep.mubr.f32.mxu1 %v1247_v3  ;;  %vm47_vm3 = vcmask 72704   ;;  %v1249_v44 = vmov 0.0|0.0   ;;  %vm1250_vm4 = vmmov 0  }
   0x2   :  { %v1200_v4 = vpack.c.bf16 %v29_v1, %v16_v0  ;;  %v18_v5 = vld [vmem:[%s1623_s2 + $0x18] sm:$0xff]  ;;  %v31_v6 = vld [vmem:[%s1623_s2 + $0x80] sm:$0x1]  ;;  %1245 = vset.pattern.permute.xlu0 %v1248_v8  ;;  %v28_v10 = vld [vmem:[%s1623_s2 + $0x68] sm:$0x1] }
   0x3   :  { %v15_v7 = vld [vmem:[%s1623_s2] sm:$0xff]  ;;  %v1206_v9 = vpack.c.bf16 %v31_v6, %v18_v5  ;;  %v17_v11 = vld [vmem:[%s1623_s2 + $0x10] sm:$0xff]  ;;  %v30_v12 = vld [vmem:[%s1623_s2 + $0x78] sm:$0x1] }
   0x4   :  { %1202 = vmatprep.subr.msk.bf16.mxu0 %vm1277_vm2, %v1200_v4  ;;  %v1203_v13 = vpack.c.bf16 %v28_v10, %v15_v7  ;;  %v1209_v14 = vpack.c.bf16 %v30_v12, %v17_v11  ;;  %v14_v15 = vld [vmem:[%s1624_s0] sm:$0xf]  ;;  %v20_v16 = vld [vmem:[%s1623_s2 + $0x28] sm:$0xff]  ;;  %v33_v17 = vld [vmem:[%s1623_s2 + $0x90] sm:$0x1] }
   0x5   :  { %1208 = vmatprep.subr.msk.bf16.mxu1 %vm1277_vm2, %v1206_v9  ;;  %v1212_v18 = vpack.c.bf16 %v33_v17, %v20_v16  ;;  %v22_v19 = vld [vmem:[%s1623_s2 + $0x38] sm:$0xff]  ;;  %v35_v20 = vld [vmem:[%s1623_s2 + $0xa0] sm:$0x1]  ;;  %v32_v23 = vld [vmem:[%s1623_s2 + $0x88] sm:$0x1] }
   0x6   :  { %v19_v21 = vld [vmem:[%s1623_s2 + $0x20] sm:$0xff]  ;;  %1205 = vmatpush1.bf16.msk.msra.mxu0 %vm1277_vm2, %v1203_v13  ;;  %1211 = vmatpush1.bf16.msk.msra.mxu1 %vm1277_vm2, %v1209_v14  ;;  %v1218_v22 = vpack.c.bf16 %v35_v20, %v22_v19  ;;  %v21_v24 = vld [vmem:[%s1623_s2 + $0x30] sm:$0xff]  ;;  %v34_v25 = vld [vmem:[%s1623_s2 + $0x98] sm:$0x1] }
   0x7   :  { %1214 = vmatprep.subr.msk.bf16.mxu0 %vm1277_vm2, %v1212_v18  ;;  %v1215_v26 = vpack.c.bf16 %v32_v23, %v19_v21  ;;  %v1221_v27 = vpack.c.bf16 %v34_v25, %v21_v24  ;;  %v24_v28 = vld [vmem:[%s1623_s2 + $0x48] sm:$0xff]  ;;  %v37_v29 = vld [vmem:[%s1623_s2 + $0xb0] sm:$0x1]  ;;  %v26_v30 = vld [vmem:[%s1623_s2 + $0x58] sm:$0xff] }
   0x8   :  { %1220 = vmatprep.subr.msk.bf16.mxu1 %vm1277_vm2, %v1218_v22  ;;  %v1224_v31 = vpack.c.bf16 %v37_v29, %v24_v28  ;;  %v39_v32 = vld [vmem:[%s1623_s2 + $0xc0] sm:$0x1]  ;;  %v36_v34 = vld [vmem:[%s1623_s2 + $0xa8] sm:$0x1]  ;;  %v25_v36 = vld [vmem:[%s1623_s2 + $0x50] sm:$0xff] }
   0x9   :  { %v23_v33 = vld [vmem:[%s1623_s2 + $0x40] sm:$0xff]  ;;  %1092 = vmatmul.mubr.msk.f32.vlgmr.msra.gmra.mrb[0].mxu0 %vm47_vm3, %v14_v15  ;;  %1095 = vmatmul.mubr.msk.f32.vlgmr.msra.gmra.mrb[0].mxu1 %vm47_vm3, %v14_v15  ;;  %v1230_v35 = vpack.c.bf16 %v39_v32, %v26_v30  ;;  %v38_v37 = vld [vmem:[%s1623_s2 + $0xb8] sm:$0x1]  ;;  %v40_v41 = vld [vmem:[%s1623_s2 + $0xc8] sm:$0x1] }
   0xa   :  { %1217 = vmatpush1.bf16.msk.msra.mxu0 %vm1277_vm2, %v1215_v26  ;;  %1223 = vmatpush1.bf16.msk.msra.mxu1 %vm1277_vm2, %v1221_v27  ;;  %v1227_v38 = vpack.c.bf16 %v36_v34, %v23_v33  ;;  %v1233_v39 = vpack.c.bf16 %v38_v37, %v25_v36  ;;  %v27_v40 = vld [vmem:[%s1623_s2 + $0x60] sm:$0xff] }
   0xb   :  { %297 = vmatprep.mubr.f32.mxu0 %v1247_v3  ;;  %368 = vmatprep.mubr.f32.mxu1 %v1247_v3  ;;  %v41_v42 = vld [vmem:[%s1625_s1] sm:$0xf]  ;;  %v1237_v43 = vpack.c.bf16 %v40_v41, %v27_v40 }
   0xc   :  { %1226 = vmatprep.subr.msk.bf16.mxu0 %vm1277_vm2, %v1224_v31  ;;  %1232 = vmatprep.subr.msk.bf16.mxu1 %vm1277_vm2, %v1230_v35 }
   0xd   :  { %1098 = vmatmul.mubr.msk.f32.vlgmr.msra.gmra.mrb[2].mxu0 %vm47_vm3, %v14_v15  ;;  %1101 = vmatmul.mubr.msk.f32.vlgmr.msra.gmra.mrb[2].mxu1 %vm47_vm3, %v14_v15 }
   0xe   :  { %1229 = vmatpush1.bf16.msk.msra.mxu0 %vm1277_vm2, %v1227_v38  ;;  %1235 = vmatpush1.bf16.msk.msra.mxu1 %vm1277_vm2, %v1233_v39 }
   0xf   :  { %439 = vmatprep.mubr.f32.mxu0 %v1247_v3  ;;  %510 = vmatprep.mubr.f32.mxu1 %v1247_v3 }
  0x10   :  { %1236 = vmatprep.subr.bf16.mxu0 %v1249_v44  ;;  %44 = vperm.xlu0 %1245, %v41_v42  }
  0x11   :  { %1104 = vmatmul.mubr.msk.f32.vlgmr.msra.gmra.mrb[4].mxu0 %vm47_vm3, %v14_v15  ;;  %1107 = vmatmul.mubr.msk.f32.vlgmr.msra.gmra.mrb[4].mxu1 %vm47_vm3, %v14_v15 }
  0x12   :  { %1239 = vmatpush3.bf16.msk.msra.mxu0 %vm1277_vm2, %v1237_v43  ;;  %1197 = vmatprep.mubr.msk.f32.mxu0 %vm1250_vm4, %v1247_v3 }
  0x15   :  { %1198 = vmatmul.mubr.msk.f32.vlgmr.msra.gmra.mrb[6].mxu0 %vm47_vm3, %v14_v15 }
  0x8f   :  { %v1399_v45 = vpop.permute.xlu0 %44 }
  0xdc   :  { %v157_v46 = vpop.f32.mrb[0].mxu0  ;;  %v228_v47 = vpop.f32.mrb[0].mxu1 }
  0xdd   :  { %v158_v48 = vadd.f32 %v157_v46, %v1399_v45  ;;  %v229_v49 = vadd.f32 %v228_v47, %v1399_v45  ;;  %v159_v50 = vpop.f32.mrb[1].mxu0  ;;  %v230_v51 = vpop.f32.mrb[1].mxu1 }
  0xde   :  { %v1404_v52 = vadd.f32 %v159_v50, %v1399_v45  ;;  %v1407_v53 = vadd.f32 %v230_v51, %v1399_v45 }
  0xdf   :  { %vm600_vm5 = vcmp.ge.f32.partialorder %v158_v48, 1.0  ;;  %vm602_vm6 = vcmp.ge.f32.partialorder %v229_v49, 1.0 }
  0xe0   :  { %v1110_v54 = vsel %vm600_vm5, 1.0, %v1247_v3  ;;  %v653_v55 = vsel %vm600_vm5, 0.0, %v158_v48  ;;  %v1112_v56 = vsel %vm602_vm6, 1.0, %v1247_v3  ;;  %v655_v57 = vsel %vm602_vm6, 0.0, %v229_v49  ;;  %v299_v58 = vpop.f32.mrb[2].mxu0  ;;  %v370_v59 = vpop.f32.mrb[2].mxu1 }
  0xe1   :  { %639 = vst [vmem:[#allocation2] sm:$0xf] %v1110_v54  ;;  %v666_v60 = vadd.f32 %v653_v55, %v158_v48  ;;  %641 = vst [vmem:[#allocation2 + $0x10] sm:$0xf] %v1112_v56  ;;  %v668_v61 = vadd.f32 %v655_v57, %v229_v49  ;;  %vm601_vm7 = vcmp.ge.f32.partialorder %v1404_v52, 1.0  ;;  %vm603_vm8 = vcmp.ge.f32.partialorder %v1407_v53, 1.0 }
  0xe2   :  { %v1413_v62 = vpop.f32.mrb[3].mxu0  ;;  %v1415_v63 = vpop.f32.mrb[3].mxu1  ;;  %v1111_v0 = vsel %vm601_vm7, 1.0, %v1247_v3  ;;  %v654_v1 = vsel %vm601_vm7, 0.0, %v1404_v52  ;;  %v1113_v2 = vsel %vm603_vm8, 1.0, %v1247_v3  ;;  %v656_v4 = vsel %vm603_vm8, 0.0, %v1407_v53 }
  0xe3   :  { %vm679_vm9 = vcmp.ge.f32.partialorder %v666_v60, 1.0  ;;  %vm681_vm10 = vcmp.ge.f32.partialorder %v668_v61, 1.0  ;;  %640 = vst [vmem:[#allocation2 + $0x8] sm:$0xf] %v1111_v0  ;;  %v667_v5 = vadd.f32 %v654_v1, %v1404_v52  ;;  %642 = vst [vmem:[#allocation2 + $0x18] sm:$0xf] %v1113_v2  ;;  %v669_v6 = vadd.f32 %v656_v4, %v1407_v53 }
  0xe4   :  { %v1123_v7 = vsel %vm679_vm9, 1.0, %v1247_v3  ;;  %v771_v8 = vsel %vm679_vm9, 0.0, %v666_v60  ;;  %v1125_v9 = vsel %vm681_vm10, 1.0, %v1247_v3  ;;  %v773_v10 = vsel %vm681_vm10, 0.0, %v668_v61  ;;  %v1425_v11 = vpop.f32.mrb[4].mxu0  ;;  %v1427_v12 = vpop.f32.mrb[4].mxu1 }
  0xe5   :  { %v731_v13 = vrot.slane %v1123_v7, 4  ;;  %v784_v14 = vadd.f32 %v771_v8, %v158_v48  ;;  %v733_v15 = vrot.slane %v1125_v9, 4  ;;  %v786_v16 = vadd.f32 %v773_v10, %v229_v49  ;;  %v1429_v17 = vpop.f32.mrb[5].mxu0  ;;  %v1431_v18 = vpop.f32.mrb[5].mxu1 }
  0xe6   :  { %vm680_vm11 = vcmp.ge.f32.partialorder %v667_v5, 1.0  ;;  %vm682_vm12 = vcmp.ge.f32.partialorder %v669_v6, 1.0  ;;  %v1434_v19 = vadd.f32 %v299_v58, %v1399_v45  ;;  %v1437_v20 = vadd.f32 %v370_v59, %v1399_v45 }
  0xe7   :  { %757 = vst [vmem:[#allocation2] sm:$0xf0] %v731_v13  ;;  %vm797_vm13 = vcmp.ge.f32.partialorder %v784_v14, 1.0  ;;  %759 = vst [vmem:[#allocation2 + $0x10] sm:$0xf0] %v733_v15  ;;  %vm799_vm14 = vcmp.ge.f32.partialorder %v786_v16, 1.0  ;;  %v1473_v56 = vadd.f32 %v1413_v62, %v1399_v45 }
  0xe8   :  { %v1124_v21 = vsel %vm680_vm11, 1.0, %v1247_v3  ;;  %v772_v22 = vsel %vm680_vm11, 0.0, %v667_v5  ;;  %v1136_v23 = vsel %vm797_vm13, 1.0, %v1247_v3  ;;  %v849_v24 = vsel %vm797_vm13, 0.0, %v784_v14  ;;  %v1442_v27 = vpop.f32.mrb[6].mxu0 }
  0xe9   :  { %v1138_v25 = vsel %vm799_vm14, 1.0, %v1247_v3  ;;  %v851_v26 = vsel %vm799_vm14, 0.0, %v786_v16  ;;  %836 = vst [vmem:[#allocation2 + $0x68] sm:$0xf] %v1136_v23  ;;  %v862_v28 = vadd.f32 %v849_v24, %v158_v48  ;;  %v732_v30 = vrot.slane %v1124_v21, 4  ;;  %v1199_v32 = vpop.f32.mrb[7].mxu0 }
  0xea   :  { %838 = vst [vmem:[#allocation2 + $0x78] sm:$0xf] %v1138_v25  ;;  %v864_v29 = vadd.f32 %v851_v26, %v229_v49  ;;  %v785_v31 = vadd.f32 %v772_v22, %v1404_v52  ;;  %v1126_v33 = vsel %vm682_vm12, 1.0, %v1247_v3  ;;  %v774_v34 = vsel %vm682_vm12, 0.0, %v669_v6 }
  0xeb   :  { %vm604_vm15 = vcmp.ge.f32.partialorder %v1434_v19, 1.0  ;;  %vm606_vm0 = vcmp.ge.f32.partialorder %v1437_v20, 1.0  ;;  %vm875_vm1 = vcmp.ge.f32.partialorder %v862_v28, 1.0  ;;  %758 = vst [vmem:[#allocation2 + $0x8] sm:$0xf0] %v732_v30  ;;  %v734_v35 = vrot.slane %v1126_v33, 4 }
  0xec   :  { %vm877_vm2 = vcmp.ge.f32.partialorder %v864_v29, 1.0  ;;  %vm798_vm3 = vcmp.ge.f32.partialorder %v785_v31, 1.0  ;;  %v1149_v36 = vsel %vm875_vm1, 1.0, %v1247_v3  ;;  %v787_v43 = vadd.f32 %v774_v34, %v1407_v53 }
  0xed   :  { %v1151_v37 = vsel %vm877_vm2, 1.0, %v1247_v3  ;;  %v1137_v38 = vsel %vm798_vm3, 1.0, %v1247_v3  ;;  %v850_v39 = vsel %vm798_vm3, 0.0, %v785_v31  ;;  %v927_v40 = vrot.slane %v1149_v36, 4  ;;  %760 = vst [vmem:[#allocation2 + $0x18] sm:$0xf0] %v734_v35 }
  0xee   :  { %v929_v41 = vrot.slane %v1151_v37, 4  ;;  %837 = vst [vmem:[#allocation2 + $0x70] sm:$0xf] %v1137_v38  ;;  %v863_v42 = vadd.f32 %v850_v39, %v1404_v52  ;;  %v1114_v44 = vsel %vm604_vm15, 1.0, %v1247_v3  ;;  %v657_v46 = vsel %vm604_vm15, 0.0, %v1434_v19  ;;  %v966_v51 = vld [vmem:[#allocation2] sm:$0xff] }
  0xef   :  { %v1116_v47 = vsel %vm606_vm0, 1.0, %v1247_v3  ;;  %v659_v48 = vsel %vm606_vm0, 0.0, %v1437_v20  ;;  %953 = vst [vmem:[#allocation2 + $0x68] sm:$0xf0] %v927_v40  ;;  %vm800_vm5 = vcmp.ge.f32.partialorder %v787_v43, 1.0  ;;  %v670_v49 = vadd.f32 %v657_v46, %v1434_v19  ;;  %v968_v59 = vld [vmem:[#allocation2 + $0x10] sm:$0xff] }
  0xf0   :  { %955 = vst [vmem:[#allocation2 + $0x78] sm:$0xf0] %v929_v41  ;;  %vm876_vm4 = vcmp.ge.f32.partialorder %v863_v42, 1.0  ;;  %643 = vst [vmem:[#allocation2 + $0x20] sm:$0xf] %v1114_v44  ;;  %v672_v50 = vadd.f32 %v659_v48, %v1437_v20  ;;  %v1139_v54 = vsel %vm800_vm5, 1.0, %v1247_v3  ;;  %v1497_v28 = vadd.f32 %v1415_v63, %v1399_v45 }
  0xf1   :  { %645 = vst [vmem:[#allocation2 + $0x30] sm:$0xf] %v1116_v47  ;;  %v1150_v52 = vsel %vm876_vm4, 1.0, %v1247_v3  ;;  %v852_v55 = vsel %vm800_vm5, 0.0, %v787_v43  ;;  %839 = vst [vmem:[#allocation2 + $0x80] sm:$0xf] %v1139_v54  ;;  %v1501_v29 = vadd.f32 %v1425_v11, %v1399_v45  ;;  %v1509_v30 = vadd.f32 %v1429_v17, %v1399_v45 }
  0xf2   :  { %v928_v57 = vrot.slane %v1150_v52, 4  ;;  %v865_v58 = vadd.f32 %v852_v55, %v1407_v53  ;;  %vm683_vm6 = vcmp.ge.f32.partialorder %v670_v49, 1.0  ;;  %vm685_vm7 = vcmp.ge.f32.partialorder %v672_v50, 1.0  ;;  %v967_v60 = vld [vmem:[#allocation2 + $0x8] sm:$0xff] }
  0xf3   :  { %v1127_v61 = vsel %vm683_vm6, 1.0, %v1247_v3  ;;  %v775_v0 = vsel %vm683_vm6, 0.0, %v670_v49  ;;  %v1129_v1 = vsel %vm685_vm7, 1.0, %v1247_v3  ;;  %v777_v2 = vsel %vm685_vm7, 0.0, %v672_v50 }
  0xf4   :  { %954 = vst [vmem:[#allocation2 + $0x70] sm:$0xf0] %v928_v57  ;;  %v1176_v4 = vpack.c.bf16 %v967_v60, %v966_v51  ;;  %vm878_vm8 = vcmp.ge.f32.partialorder %v865_v58, 1.0  ;;  %v735_v5 = vrot.slane %v1127_v61, 4  ;;  %v788_v62 = vadd.f32 %v775_v0, %v1434_v19  ;;  %v969_v7 = vld [vmem:[#allocation2 + $0x18] sm:$0xff] }
  0xf5   :  { %v1152_v6 = vsel %vm878_vm8, 1.0, %v1247_v3  ;;  %v737_v53 = vrot.slane %v1129_v1, 4  ;;  %v790_v8 = vadd.f32 %v777_v2, %v1437_v20  ;;  %vm605_vm9 = vcmp.ge.f32.partialorder %v1473_v56, 1.0 }
  0xf6   :  { %1072 = vst [vmem:[%s1626_s3] sm:$0xff] %v1176_v4  ;;  %v930_v9 = vrot.slane %v1152_v6, 4  ;;  %v1177_v10 = vpack.c.bf16 %v969_v7, %v968_v59  ;;  %761 = vst [vmem:[#allocation2 + $0x20] sm:$0xf0] %v735_v5  ;;  %vm801_vm10 = vcmp.ge.f32.partialorder %v788_v62, 1.0  ;;  %v1115_v13 = vsel %vm605_vm9, 1.0, %v1247_v3  ;;  %v979_v25 = vld [vmem:[#allocation2 + $0x68] sm:$0xff] }
  0xf7   :  { %v1140_v14 = vsel %vm801_vm10, 1.0, %v1247_v3  ;;  %v853_v15 = vsel %vm801_vm10, 0.0, %v788_v62  ;;  %763 = vst [vmem:[#allocation2 + $0x30] sm:$0xf0] %v737_v53  ;;  %vm803_vm11 = vcmp.ge.f32.partialorder %v790_v8, 1.0  ;;  %v658_v16 = vsel %vm605_vm9, 0.0, %v1473_v56 }
  0xf8   :  { %644 = vst [vmem:[#allocation2 + $0x28] sm:$0xf] %v1115_v13  ;;  %956 = vst [vmem:[#allocation2 + $0x80] sm:$0xf0] %v930_v9  ;;  %v866_v21 = vadd.f32 %v853_v15, %v1434_v19  ;;  %v1142_v22 = vsel %vm803_vm11, 1.0, %v1247_v3  ;;  %v855_v23 = vsel %vm803_vm11, 0.0, %v790_v8  ;;  %v671_v24 = vadd.f32 %v658_v16, %v1473_v56 }
  0xf9   :  { %1073 = vst [vmem:[%s1626_s3 + $0x8] sm:$0xff] %v1177_v10  ;;  %840 = vst [vmem:[#allocation2 + $0x88] sm:$0xf] %v1140_v14  ;;  %v868_v26 = vadd.f32 %v855_v23, %v1437_v20  ;;  %v1505_v19 = vadd.f32 %v1427_v12, %v1399_v45  ;;  %v1513_v20 = vadd.f32 %v1431_v18, %v1399_v45  ;;  %v981_v36 = vld [vmem:[#allocation2 + $0x78] sm:$0xff]  ;;  %vm607_vm15 = vcmp.ge.f32.partialorder %v1497_v28, 1.0 }
  0xfa   :  { %842 = vst [vmem:[#allocation2 + $0x98] sm:$0xf] %v1142_v22  ;;  %vm879_vm12 = vcmp.ge.f32.partialorder %v866_v21, 1.0  ;;  %vm684_vm13 = vcmp.ge.f32.partialorder %v671_v24, 1.0  ;;  %vm608_vm0 = vcmp.ge.f32.partialorder %v1501_v29, 1.0  ;;  %v1117_v18 = vsel %vm607_vm15, 1.0, %v1247_v3 }
  0xfb   :  { %v980_v63 = vld [vmem:[#allocation2 + $0x70] sm:$0xff]  ;;  %v1153_v31 = vsel %vm879_vm12, 1.0, %v1247_v3  ;;  %vm881_vm14 = vcmp.ge.f32.partialorder %v868_v26, 1.0  ;;  %v1128_v11 = vsel %vm684_vm13, 1.0, %v1247_v3  ;;  %v776_v32 = vsel %vm684_vm13, 0.0, %v671_v24 }
  0xfc   :  { %v1183_v33 = vpack.c.bf16 %v980_v63, %v979_v25  ;;  %v931_v12 = vrot.slane %v1153_v31, 4  ;;  %v1155_v34 = vsel %vm881_vm14, 1.0, %v1247_v3  ;;  %v736_v35 = vrot.slane %v1128_v11, 4  ;;  %646 = vst [vmem:[#allocation2 + $0x38] sm:$0xf] %v1117_v18 }
  0xfd   :  { %v933_v37 = vrot.slane %v1155_v34, 4  ;;  %v789_v17 = vadd.f32 %v776_v32, %v1473_v56  ;;  %v660_v38 = vsel %vm607_vm15, 0.0, %v1497_v28  ;;  %v1118_v39 = vsel %vm608_vm0, 1.0, %v1247_v3  ;;  %v970_v57 = vld [vmem:[#allocation2 + $0x20] sm:$0xff] }
  0xfe   :  { %1079 = vst [vmem:[%s1626_s3 + $0x34] sm:$0xff] %v1183_v33  ;;  %957 = vst [vmem:[#allocation2 + $0x88] sm:$0xf0] %v931_v12  ;;  %v661_v40 = vsel %vm608_vm0, 0.0, %v1501_v29  ;;  %v673_v42 = vadd.f32 %v660_v38, %v1497_v28  ;;  %vm610_vm2 = vcmp.ge.f32.partialorder %v1505_v19, 1.0  ;;  %vm609_vm6 = vcmp.ge.f32.partialorder %v1509_v30, 1.0 }
  0xff   :  { %762 = vst [vmem:[#allocation2 + $0x28] sm:$0xf0] %v736_v35  ;;  %v982_v41 = vld [vmem:[#allocation2 + $0x80] sm:$0xff]  ;;  %959 = vst [vmem:[#allocation2 + $0x98] sm:$0xf0] %v933_v37  ;;  %vm802_vm1 = vcmp.ge.f32.partialorder %v789_v17, 1.0  ;;  %v674_v43 = vadd.f32 %v661_v40, %v1501_v29  ;;  %v584_v38 = vadd.f32 %v1442_v27, %v1399_v45 }
 0x100   :  { %647 = vst [vmem:[#allocation2 + $0x40] sm:$0xf] %v1118_v39  ;;  %v1184_v44 = vpack.c.bf16 %v982_v41, %v981_v36  ;;  %v1141_v46 = vsel %vm802_vm1, 1.0, %v1247_v3  ;;  %v854_v47 = vsel %vm802_vm1, 0.0, %v789_v17  ;;  %v1120_v48 = vsel %vm610_vm2, 1.0, %v1247_v3  ;;  %v972_v22 = vld [vmem:[#allocation2 + $0x30] sm:$0xff] }
 0x101   :  { %841 = vst [vmem:[#allocation2 + $0x90] sm:$0xf] %v1141_v46  ;;  %v867_v49 = vadd.f32 %v854_v47, %v1473_v56  ;;  %vm686_vm3 = vcmp.ge.f32.partialorder %v673_v42, 1.0  ;;  %vm687_vm4 = vcmp.ge.f32.partialorder %v674_v43, 1.0  ;;  %649 = vst [vmem:[#allocation2 + $0x50] sm:$0xf] %v1120_v48 }
 0x102   :  { %v663_v50 = vsel %vm610_vm2, 0.0, %v1505_v19  ;;  %1080 = vst [vmem:[%s1626_s3 + $0x3c] sm:$0xff] %v1184_v44  ;;  %v1130_v51 = vsel %vm686_vm3, 1.0, %v1247_v3  ;;  %v778_v52 = vsel %vm686_vm3, 0.0, %v673_v42  ;;  %v1131_v54 = vsel %vm687_vm4, 1.0, %v1247_v3 }
 0x103   :  { %v779_v55 = vsel %vm687_vm4, 0.0, %v674_v43  ;;  %vm880_vm5 = vcmp.ge.f32.partialorder %v867_v49, 1.0  ;;  %v738_v58 = vrot.slane %v1130_v51, 4  ;;  %v791_v56 = vadd.f32 %v778_v52, %v1497_v28 }
 0x104   :  { %v739_v59 = vrot.slane %v1131_v54, 4  ;;  %v1154_v60 = vsel %vm880_vm5, 1.0, %v1247_v3  ;;  %v792_v61 = vadd.f32 %v779_v55, %v1501_v29  ;;  %v676_v0 = vadd.f32 %v663_v50, %v1505_v19 }
 0x105   :  { %v932_v1 = vrot.slane %v1154_v60, 4  ;;  %764 = vst [vmem:[#allocation2 + $0x38] sm:$0xf0] %v738_v58  ;;  %vm804_vm7 = vcmp.ge.f32.partialorder %v791_v56, 1.0  ;;  %v1119_v4 = vsel %vm609_vm6, 1.0, %v1247_v3  ;;  %v662_v5 = vsel %vm609_vm6, 0.0, %v1509_v30 }
 0x106   :  { %v971_v2 = vld [vmem:[#allocation2 + $0x28] sm:$0xff]  ;;  %765 = vst [vmem:[#allocation2 + $0x40] sm:$0xf0] %v739_v59  ;;  %v1143_v6 = vsel %vm804_vm7, 1.0, %v1247_v3  ;;  %v856_v7 = vsel %vm804_vm7, 0.0, %v791_v56  ;;  %vm805_vm8 = vcmp.ge.f32.partialorder %v792_v61, 1.0  ;;  %v675_v15 = vadd.f32 %v662_v5, %v1509_v30 }
 0x107   :  { %v1178_v62 = vpack.c.bf16 %v971_v2, %v970_v57  ;;  %648 = vst [vmem:[#allocation2 + $0x48] sm:$0xf] %v1119_v4  ;;  %958 = vst [vmem:[#allocation2 + $0x90] sm:$0xf0] %v932_v1  ;;  %v869_v53 = vadd.f32 %v856_v7, %v1497_v28  ;;  %v1144_v8 = vsel %vm805_vm8, 1.0, %v1247_v3  ;;  %v857_v9 = vsel %vm805_vm8, 0.0, %v792_v61 }
 0x108   :  { %843 = vst [vmem:[#allocation2 + $0xa0] sm:$0xf] %v1143_v6  ;;  %vm689_vm9 = vcmp.ge.f32.partialorder %v676_v0, 1.0  ;;  %844 = vst [vmem:[#allocation2 + $0xa8] sm:$0xf] %v1144_v8  ;;  %v870_v10 = vadd.f32 %v857_v9, %v1501_v29  ;;  %vm611_vm11 = vcmp.ge.f32.partialorder %v1513_v20, 1.0 }
 0x109   :  { %1074 = vst [vmem:[%s1626_s3 + $0x10] sm:$0xff] %v1178_v62  ;;  %v1133_v13 = vsel %vm689_vm9, 1.0, %v1247_v3  ;;  %v781_v14 = vsel %vm689_vm9, 0.0, %v676_v0  ;;  %vm882_vm10 = vcmp.ge.f32.partialorder %v869_v53, 1.0  ;;  %vm688_vm13 = vcmp.ge.f32.partialorder %v675_v15, 1.0  ;;  %v983_v29 = vld [vmem:[#allocation2 + $0x88] sm:$0xff] }
 0x10a   :  { %v741_v16 = vrot.slane %v1133_v13, 4  ;;  %v794_v21 = vadd.f32 %v781_v14, %v1505_v19  ;;  %v1156_v23 = vsel %vm882_vm10, 1.0, %v1247_v3  ;;  %vm883_vm12 = vcmp.ge.f32.partialorder %v870_v10, 1.0  ;;  %v985_v42 = vld [vmem:[#allocation2 + $0x98] sm:$0xff] }
 0x10b   :  { %v1121_v24 = vsel %vm611_vm11, 1.0, %v1247_v3  ;;  %v934_v25 = vrot.slane %v1156_v23, 4  ;;  %v1157_v26 = vsel %vm883_vm12, 1.0, %v1247_v3  ;;  %v1132_v28 = vsel %vm688_vm13, 1.0, %v1247_v3 }
 0x10c   :  { %767 = vst [vmem:[#allocation2 + $0x50] sm:$0xf0] %v741_v16  ;;  %vm807_vm14 = vcmp.ge.f32.partialorder %v794_v21, 1.0  ;;  %650 = vst [vmem:[#allocation2 + $0x58] sm:$0xf] %v1121_v24  ;;  %v973_v63 = vld [vmem:[#allocation2 + $0x38] sm:$0xff] }
 0x10d   :  { %v935_v31 = vrot.slane %v1157_v26, 4  ;;  %v1146_v11 = vsel %vm807_vm14, 1.0, %v1247_v3  ;;  %v859_v32 = vsel %vm807_vm14, 0.0, %v794_v21  ;;  %v740_v33 = vrot.slane %v1132_v28, 4  ;;  %960 = vst [vmem:[#allocation2 + $0xa0] sm:$0xf0] %v934_v25 }
 0x10e   :  { %v1179_v12 = vpack.c.bf16 %v973_v63, %v972_v22  ;;  %846 = vst [vmem:[#allocation2 + $0xb8] sm:$0xf] %v1146_v11  ;;  %v872_v34 = vadd.f32 %v859_v32, %v1505_v19  ;;  %v780_v35 = vsel %vm688_vm13, 0.0, %v675_v15  ;;  %v664_v36 = vsel %vm611_vm11, 0.0, %v1513_v20  ;;  %v984_v37 = vld [vmem:[#allocation2 + $0x90] sm:$0xff]  ;;  %v974_v48 = vld [vmem:[#allocation2 + $0x40] sm:$0xff] }
 0x10f   :  { %961 = vst [vmem:[#allocation2 + $0xa8] sm:$0xf0] %v935_v31  ;;  %766 = vst [vmem:[#allocation2 + $0x48] sm:$0xf0] %v740_v33  ;;  %v793_v17 = vadd.f32 %v780_v35, %v1509_v30  ;;  %v677_v18 = vadd.f32 %v664_v36, %v1513_v20  ;;  %v1185_v39 = vpack.c.bf16 %v984_v37, %v983_v29  ;;  %vm651_vm0 = vcmask 257024  }
 0x110   :  { %1075 = vst [vmem:[%s1626_s3 + $0x18] sm:$0xff] %v1179_v12  ;;  %vm885_vm15 = vcmp.ge.f32.partialorder %v872_v34, 1.0  ;;  %vm612_vm3 = vcmp.ge.f32.partialorder %v584_v38, 1.0  ;;  %vm769_vm7 = vcmask 261124  }
 0x111   :  { %v1159_v19 = vsel %vm885_vm15, 1.0, %v1247_v3  ;;  %vm806_vm1 = vcmp.ge.f32.partialorder %v793_v17, 1.0  ;;  %vm690_vm2 = vcmp.ge.f32.partialorder %v677_v18, 1.0  ;;  %1081 = vst [vmem:[%s1626_s3 + $0x44] sm:$0xff] %v1185_v39  ;;  %v1122_v47 = vsel %vm612_vm3, 1.0, %v1247_v3 }
 0x112   :  { %v937_v40 = vrot.slane %v1159_v19, 4  ;;  %v1145_v41 = vsel %vm806_vm1, 1.0, %v1247_v3  ;;  %v858_v45 = vsel %vm806_vm1, 0.0, %v793_v17  ;;  %v1134_v27 = vsel %vm690_vm2, 1.0, %v1247_v3  ;;  %652 = vst.msk [vmem:[#allocation2 + $0x60] sm:$0xf] %vm651_vm0, %v1122_v47 }
 0x113   :  { %845 = vst [vmem:[#allocation2 + $0xb0] sm:$0xf] %v1145_v41  ;;  %v871_v43 = vadd.f32 %v858_v45, %v1509_v30  ;;  %v742_v44 = vrot.slane %v1134_v27, 4  ;;  %v782_v46 = vsel %vm690_vm2, 0.0, %v677_v18  ;;  %v665_v50 = vsel %vm612_vm3, 0.0, %v584_v38  ;;  %v976_v1 = vld [vmem:[#allocation2 + $0x50] sm:$0xff] }
 0x114   :  { %963 = vst [vmem:[#allocation2 + $0xb8] sm:$0xf0] %v937_v40  ;;  %v795_v49 = vadd.f32 %v782_v46, %v1513_v20  ;;  %v986_v51 = vld [vmem:[#allocation2 + $0xa0] sm:$0xff]  ;;  %v678_v52 = vadd.f32 %v665_v50, %v584_v38 }
 0x115   :  { %vm884_vm4 = vcmp.ge.f32.partialorder %v871_v43, 1.0  ;;  %768 = vst [vmem:[#allocation2 + $0x58] sm:$0xf0] %v742_v44  ;;  %v1186_v54 = vpack.c.bf16 %v986_v51, %v985_v42 }
 0x116   :  { %v1158_v30 = vsel %vm884_vm4, 1.0, %v1247_v3  ;;  %v975_v55 = vld [vmem:[#allocation2 + $0x48] sm:$0xff]  ;;  %vm808_vm5 = vcmp.ge.f32.partialorder %v795_v49, 1.0  ;;  %vm691_vm6 = vcmp.ge.f32.partialorder %v678_v52, 1.0 }
 0x117   :  { %v936_v57 = vrot.slane %v1158_v30, 4  ;;  %v1180_v58 = vpack.c.bf16 %v975_v55, %v974_v48  ;;  %v1147_v56 = vsel %vm808_vm5, 1.0, %v1247_v3  ;;  %v860_v59 = vsel %vm808_vm5, 0.0, %v795_v49  ;;  %1082 = vst [vmem:[%s1626_s3 + $0x4c] sm:$0xff] %v1186_v54  ;;  %v987_v8 = vld [vmem:[#allocation2 + $0xa8] sm:$0xff] }
 0x118   :  { %847 = vst [vmem:[#allocation2 + $0xc0] sm:$0xf] %v1147_v56  ;;  %v873_v60 = vadd.f32 %v860_v59, %v1513_v20  ;;  %v1135_v61 = vsel %vm691_vm6, 1.0, %v1247_v3  ;;  %v783_v0 = vsel %vm691_vm6, 0.0, %v678_v52 }
 0x119   :  { %962 = vst [vmem:[#allocation2 + $0xb0] sm:$0xf0] %v936_v57  ;;  %1076 = vst [vmem:[%s1626_s3 + $0x20] sm:$0xff] %v1180_v58  ;;  %v743_v2 = vrot.slane %v1135_v61, 4  ;;  %v796_v4 = vadd.f32 %v783_v0, %v584_v38 }
 0x11a   :  { %vm886_vm8 = vcmp.ge.f32.partialorder %v873_v60, 1.0 }
 0x11b   :  { %v1160_v5 = vsel %vm886_vm8, 1.0, %v1247_v3  ;;  %770 = vst.msk [vmem:[#allocation2 + $0x60] sm:$0xf0] %vm769_vm7, %v743_v2  ;;  %vm809_vm9 = vcmp.ge.f32.partialorder %v796_v4, 1.0  ;;  %v989_v16 = vld [vmem:[#allocation2 + $0xb8] sm:$0xff] }
 0x11c   :  { %v938_v62 = vrot.slane %v1160_v5, 4  ;;  %v977_v6 = vld [vmem:[#allocation2 + $0x58] sm:$0xff]  ;;  %v1148_v7 = vsel %vm809_vm9, 1.0, %v1247_v3  ;;  %v861_v53 = vsel %vm809_vm9, 0.0, %v796_v4 }
 0x11d   :  { %v1181_v20 = vpack.c.bf16 %v977_v6, %v976_v1  ;;  %848 = vst.msk [vmem:[#allocation2 + $0xc8] sm:$0xf] %vm651_vm0, %v1148_v7  ;;  %v874_v9 = vadd.f32 %v861_v53, %v584_v38 }
 0x11e   :  { %964 = vst [vmem:[#allocation2 + $0xc0] sm:$0xf0] %v938_v62 }
 0x11f   :  { %1077 = vst [vmem:[%s1626_s3 + $0x28] sm:$0xff] %v1181_v20  ;;  %vm887_vm10 = vcmp.ge.f32.partialorder %v874_v9, 1.0 }
 0x120   :  { %v988_v10 = vld [vmem:[#allocation2 + $0xb0] sm:$0xff]  ;;  %v1161_v14 = vsel %vm887_vm10, 1.0, %v1247_v3 }
 0x121   :  { %v1187_v13 = vpack.c.bf16 %v988_v10, %v987_v8  ;;  %v939_v15 = vrot.slane %v1161_v14, 4 }
 0x122   :  { %v978_v21 = vld [vmem:[#allocation2 + $0x60] sm:$0xff] }
 0x123   :  { %1083 = vst [vmem:[%s1626_s3 + $0x54] sm:$0xff] %v1187_v13  ;;  %965 = vst.msk [vmem:[#allocation2 + $0xc8] sm:$0xf0] %vm769_vm7, %v939_v15  ;;  %v1182_v22 = vpack.c.bf16 %v978_v21, %v978_v21 }
 0x125   :  { %v990_v23 = vld [vmem:[#allocation2 + $0xc0] sm:$0xff]  ;;  %1078 = vst.msk [vmem:[%s1626_s3 + $0x30] sm:$0xf] %vm651_vm0, %v1182_v22 }
 0x126   :  { %v1188_v24 = vpack.c.bf16 %v990_v23, %v989_v16 }
 0x128   :  { %1084 = vst [vmem:[%s1626_s3 + $0x5c] sm:$0xff] %v1188_v24 }
 0x12a   :  { %v991_v3 = vld [vmem:[#allocation2 + $0xc8] sm:$0xff] }
 0x12b   :  { %v1189_v25 = vpack.c.bf16 %v991_v3, %v991_v3 }
 0x12d   :  { %1085 = vst.msk [vmem:[%s1626_s3 + $0x64] sm:$0xf] %vm651_vm0, %v1189_v25 }

// kernel: csnn_forward.4
= control target key start
LH: loop header
LB: loop body
LE: loop exit
PB: predicated region body
PF: predicated region fallthrough
CT: control target
= control target key end

     0   :  { %v906_v3 = vmov 0   ;;  %vm266_vm0 = vcmask 1041408   ;;  %vm262_vm1 = vcmask 293888   ;;  %s1167_s2 = inlined_call_operand.vmem [shape: bf16[36,2048], index: 2, kind: input, shape index: {}]   ;;  %s1168_s0 = inlined_call_operand.vmem [shape: bf16[4,36], index: 0, kind: input, shape index: {}]   ;;  %s1169_s1 = inlined_call_operand.vmem [shape: f32[4,1], index: 1, kind: input, shape index: {}]   ;;  %s1170_s3 = inlined_call_operand.vmem [shape: bf16[16,512], index: 3, kind: output, shape index: {}]  }
   0x1   :  { %v16_v0 = vld [vmem:[%s1167_s2] sm:$0xff]  ;;  %v17_v2 = vld [vmem:[%s1167_s2 + $0x8] sm:$0xff]  ;;  %347 = vmatprep.mubr.bf16.mxu0 %v906_v3  ;;  %388 = vmatprep.mubr.bf16.mxu1 %v906_v3  ;;  %v18_v23 = vld [vmem:[%s1167_s2 + $0x10] sm:$0xff] }
   0x2   :  { %v24_v1 = vld [vmem:[%s1167_s2 + $0x40] sm:$0xff]  ;;  %v25_v5 = vld [vmem:[%s1167_s2 + $0x48] sm:$0xff]  ;;  %889 = vset.pattern.permute.xlu0 %v906_v3  ;;  %v26_v24 = vld [vmem:[%s1167_s2 + $0x50] sm:$0xff] }
   0x3   :  { %v800_v4 = vcombine.high %v16_v0, %v24_v1  ;;  %v799_v6 = vcombine.low %v16_v0, %v24_v1  ;;  %v32_v7 = vld [vmem:[%s1167_s2 + $0x80] sm:$0xff]  ;;  %v802_v9 = vcombine.high %v17_v2, %v25_v5  ;;  %v801_v10 = vcombine.low %v17_v2, %v25_v5  ;;  %v33_v12 = vld [vmem:[%s1167_s2 + $0x88] sm:$0xff]  ;;  %v19_v25 = vld [vmem:[%s1167_s2 + $0x18] sm:$0xff] }
   0x4   :  { %v40_v8 = vld [vmem:[%s1167_s2 + $0xc0] sm:$0xff]  ;;  %v41_v13 = vld [vmem:[%s1167_s2 + $0xc8] sm:$0xff]  ;;  %v27_v26 = vld [vmem:[%s1167_s2 + $0x58] sm:$0xff]  ;;  %v804_v28 = vcombine.high %v18_v23, %v26_v24  ;;  %v803_v36 = vcombine.low %v18_v23, %v26_v24 }
   0x5   :  { %v816_v11 = vcombine.high %v32_v7, %v40_v8  ;;  %v48_v14 = vld [vmem:[%s1167_s2 + $0x100] sm:$0x33]  ;;  %315 = vmatprep.subr.bf16.mxu0 %v800_v4  ;;  %v818_v15 = vcombine.high %v33_v12, %v41_v13  ;;  %v49_v16 = vld [vmem:[%s1167_s2 + $0x108] sm:$0x33]  ;;  %356 = vmatprep.subr.bf16.mxu1 %v802_v9  ;;  %v815_v17 = vcombine.low %v32_v7, %v40_v8  ;;  %v34_v31 = vld [vmem:[%s1167_s2 + $0x90] sm:$0xff] }
   0x6   :  { %316 = vmatpush1.bf16.msra.mxu0 %v799_v6  ;;  %357 = vmatpush1.bf16.msra.mxu1 %v801_v10  ;;  %v817_v18 = vcombine.low %v33_v12, %v41_v13  ;;  %v832_v19 = vcombine.high %v48_v14, %v48_v14  ;;  %v831_v20 = vcombine.low %v48_v14, %v48_v14  ;;  %v42_v32 = vld [vmem:[%s1167_s2 + $0xd0] sm:$0xff]  ;;  %v35_v33 = vld [vmem:[%s1167_s2 + $0x98] sm:$0xff]  ;;  %v992_v35 = vld [vmem:[%s1168_s0] sm:$0x3] }
   0x7   :  { %317 = vmatprep.subr.bf16.mxu0 %v816_v11  ;;  %358 = vmatprep.subr.bf16.mxu1 %v818_v15  ;;  %v834_v21 = vcombine.high %v49_v16, %v49_v16  ;;  %v833_v22 = vcombine.low %v49_v16, %v49_v16  ;;  %v806_v30 = vcombine.high %v19_v25, %v27_v26  ;;  %v43_v34 = vld [vmem:[%s1167_s2 + $0xd8] sm:$0xff]  ;;  %v50_v40 = vld [vmem:[%s1167_s2 + $0x110] sm:$0x33]  ;;  %v56_v41 = vld [vmem:[%s1169_s1] sm:$0xf] }
   0x8   :  { %v268_v27 = vsel %vm266_vm0, %v831_v20, 0  ;;  %v805_v37 = vcombine.low %v19_v25, %v27_v26  ;;  %v820_v38 = vcombine.high %v34_v31, %v42_v32  ;;  %v822_v39 = vcombine.high %v35_v33, %v43_v34  ;;  %v51_v42 = vld [vmem:[%s1167_s2 + $0x118] sm:$0x33]  ;;  %59 = vperm.xlu0 %889, %v56_v41   ;;  %v20_v49 = vld [vmem:[%s1167_s2 + $0x20] sm:$0xff]  ;;  %v21_v51 = vld [vmem:[%s1167_s2 + $0x28] sm:$0xff] }
   0x9   :  { %v274_v29 = vsel %vm266_vm0, %v833_v22, 0  ;;  %v819_v43 = vcombine.low %v34_v31, %v42_v32  ;;  %v821_v44 = vcombine.low %v35_v33, %v43_v34  ;;  %v836_v45 = vcombine.high %v50_v40, %v50_v40  ;;  %v28_v50 = vld [vmem:[%s1167_s2 + $0x60] sm:$0xff]  ;;  %v29_v52 = vld [vmem:[%s1167_s2 + $0x68] sm:$0xff]  ;;  %v22_v10 = vld [vmem:[%s1167_s2 + $0x30] sm:$0xff] }
   0xa   :  { %318 = vmatpush1.bf16.msra.mxu0 %v815_v17  ;;  %359 = vmatpush1.bf16.msra.mxu1 %v817_v18  ;;  %v835_v46 = vcombine.low %v50_v40, %v50_v40  ;;  %v838_v47 = vcombine.high %v51_v42, %v51_v42  ;;  %v837_v48 = vcombine.low %v51_v42, %v51_v42  ;;  %v36_v57 = vld [vmem:[%s1167_s2 + $0xa0] sm:$0xff]  ;;  %v37_v59 = vld [vmem:[%s1167_s2 + $0xa8] sm:$0xff]  ;;  %v30_v11 = vld [vmem:[%s1167_s2 + $0x70] sm:$0xff] }
   0xb   :  { %847 = vmatprep.subr.msk.bf16.mxu0 %vm266_vm0, %v832_v19  ;;  %849 = vmatprep.subr.msk.bf16.mxu1 %vm266_vm0, %v834_v21  ;;  %v808_v54 = vcombine.high %v20_v49, %v28_v50  ;;  %v810_v56 = vcombine.high %v21_v51, %v29_v52  ;;  %v44_v58 = vld [vmem:[%s1167_s2 + $0xe0] sm:$0xff]  ;;  %v45_v60 = vld [vmem:[%s1167_s2 + $0xe8] sm:$0xff]  ;;  %v807_v61 = vcombine.low %v20_v49, %v28_v50  ;;  %v23_v12 = vld [vmem:[%s1167_s2 + $0x38] sm:$0xff] }
   0xc   :  { %v280_v53 = vsel %vm266_vm0, %v835_v46, 0  ;;  %v286_v55 = vsel %vm266_vm0, %v837_v48, 0  ;;  %v809_v62 = vcombine.low %v21_v51, %v29_v52  ;;  %v824_v63 = vcombine.high %v36_v57, %v44_v58  ;;  %v52_v1 = vld [vmem:[%s1167_s2 + $0x120] sm:$0x33]  ;;  %v53_v2 = vld [vmem:[%s1167_s2 + $0x128] sm:$0x33] }
   0xd   :  { %v826_v0 = vcombine.high %v37_v59, %v45_v60  ;;  %v823_v4 = vcombine.low %v36_v57, %v44_v58  ;;  %v825_v5 = vcombine.low %v37_v59, %v45_v60  ;;  %v840_v6 = vcombine.high %v52_v1, %v52_v1  ;;  %v31_v13 = vld [vmem:[%s1167_s2 + $0x78] sm:$0xff]  ;;  %v38_v18 = vld [vmem:[%s1167_s2 + $0xb0] sm:$0xff] }
   0xe   :  { %320 = vmatpush1.bf16.msra.mxu0 %v268_v27  ;;  %361 = vmatpush1.bf16.msra.mxu1 %v274_v29  ;;  %v839_v7 = vcombine.low %v52_v1, %v52_v1  ;;  %v842_v8 = vcombine.high %v53_v2, %v53_v2  ;;  %v841_v9 = vcombine.low %v53_v2, %v53_v2  ;;  %v46_v19 = vld [vmem:[%s1167_s2 + $0xf0] sm:$0xff]  ;;  %v39_v20 = vld [vmem:[%s1167_s2 + $0xb8] sm:$0xff]  ;;  %v907_v48 = vmov 0.0  }
   0xf   :  { %397 = vmatprep.subr.bf16.mxu0 %v804_v28  ;;  %438 = vmatprep.subr.bf16.mxu1 %v806_v30  ;;  %v812_v15 = vcombine.high %v22_v10, %v30_v11  ;;  %v814_v17 = vcombine.high %v23_v12, %v31_v13  ;;  %v47_v21 = vld [vmem:[%s1167_s2 + $0xf8] sm:$0xff]  ;;  %v811_v22 = vcombine.low %v22_v10, %v30_v11  ;;  %v54_v26 = vld [vmem:[%s1167_s2 + $0x130] sm:$0x33] }
  0x10   :  { %v292_v14 = vsel %vm266_vm0, %v839_v7, 0  ;;  %v298_v16 = vsel %vm266_vm0, %v841_v9, 0  ;;  %v813_v23 = vcombine.low %v23_v12, %v31_v13  ;;  %v828_v24 = vcombine.high %v38_v18, %v46_v19  ;;  %v55_v27 = vld [vmem:[%s1167_s2 + $0x138] sm:$0x33] }
  0x11   :  { %848 = vmatmul.mubr.msk.bf16.vlgmr.msra.gmra.mrb[0].mxu0 %vm262_vm1, %v992_v35  ;;  %850 = vmatmul.mubr.msk.bf16.vlgmr.msra.gmra.mrb[0].mxu1 %vm262_vm1, %v992_v35  ;;  %v830_v25 = vcombine.high %v39_v20, %v47_v21  ;;  %v827_v28 = vcombine.low %v38_v18, %v46_v19  ;;  %v829_v29 = vcombine.low %v39_v20, %v47_v21 }
  0x12   :  { %398 = vmatpush1.bf16.msra.mxu0 %v803_v36  ;;  %439 = vmatpush1.bf16.msra.mxu1 %v805_v37  ;;  %v844_v30 = vcombine.high %v54_v26, %v54_v26  ;;  %v843_v31 = vcombine.low %v54_v26, %v54_v26  ;;  %v846_v32 = vcombine.high %v55_v27, %v55_v27 }
  0x13   :  { %399 = vmatprep.subr.bf16.mxu0 %v820_v38  ;;  %440 = vmatprep.subr.bf16.mxu1 %v822_v39  ;;  %v845_v33 = vcombine.low %v55_v27, %v55_v27 }
  0x14   :  { %429 = vmatprep.mubr.bf16.mxu0 %v906_v3  ;;  %470 = vmatprep.mubr.bf16.mxu1 %v906_v3  ;;  %v304_v34 = vsel %vm266_vm0, %v843_v31, 0 }
  0x15   :  { %v310_v36 = vsel %vm266_vm0, %v845_v33, 0 }
  0x16   :  { %400 = vmatpush1.bf16.msra.mxu0 %v819_v43  ;;  %441 = vmatpush1.bf16.msra.mxu1 %v821_v44 }
  0x17   :  { %851 = vmatprep.subr.msk.bf16.mxu0 %vm266_vm0, %v836_v45  ;;  %853 = vmatprep.subr.msk.bf16.mxu1 %vm266_vm0, %v838_v47 }
  0x1a   :  { %402 = vmatpush1.bf16.msra.mxu0 %v280_v53  ;;  %443 = vmatpush1.bf16.msra.mxu1 %v286_v55 }
  0x1b   :  { %479 = vmatprep.subr.bf16.mxu0 %v808_v54  ;;  %520 = vmatprep.subr.bf16.mxu1 %v810_v56 }
  0x1d   :  { %852 = vmatmul.mubr.msk.bf16.vlgmr.msra.gmra.mrb[4].mxu0 %vm262_vm1, %v992_v35  ;;  %854 = vmatmul.mubr.msk.bf16.vlgmr.msra.gmra.mrb[4].mxu1 %vm262_vm1, %v992_v35 }
  0x1e   :  { %480 = vmatpush1.bf16.msra.mxu0 %v807_v61  ;;  %521 = vmatpush1.bf16.msra.mxu1 %v809_v62 }
  0x1f   :  { %481 = vmatprep.subr.bf16.mxu0 %v824_v63  ;;  %522 = vmatprep.subr.bf16.mxu1 %v826_v0 }
  0x20   :  { %511 = vmatprep.mubr.bf16.mxu0 %v906_v3  ;;  %552 = vmatprep.mubr.bf16.mxu1 %v906_v3 }
  0x22   :  { %482 = vmatpush1.bf16.msra.mxu0 %v823_v4  ;;  %523 = vmatpush1.bf16.msra.mxu1 %v825_v5 }
  0x23   :  { %855 = vmatprep.subr.msk.bf16.mxu0 %vm266_vm0, %v840_v6  ;;  %857 = vmatprep.subr.msk.bf16.mxu1 %vm266_vm0, %v842_v8 }
  0x26   :  { %484 = vmatpush1.bf16.msra.mxu0 %v292_v14  ;;  %525 = vmatpush1.bf16.msra.mxu1 %v298_v16 }
  0x27   :  { %561 = vmatprep.subr.bf16.mxu0 %v812_v15  ;;  %602 = vmatprep.subr.bf16.mxu1 %v814_v17 }
  0x29   :  { %856 = vmatmul.mubr.msk.bf16.vlgmr.msra.gmra.mrb[8].mxu0 %vm262_vm1, %v992_v35  ;;  %858 = vmatmul.mubr.msk.bf16.vlgmr.msra.gmra.mrb[8].mxu1 %vm262_vm1, %v992_v35 }
  0x2a   :  { %562 = vmatpush1.bf16.msra.mxu0 %v811_v22  ;;  %603 = vmatpush1.bf16.msra.mxu1 %v813_v23 }
  0x2b   :  { %563 = vmatprep.subr.bf16.mxu0 %v828_v24  ;;  %604 = vmatprep.subr.bf16.mxu1 %v830_v25 }
  0x2c   :  { %593 = vmatprep.mubr.bf16.mxu0 %v906_v3  ;;  %634 = vmatprep.mubr.bf16.mxu1 %v906_v3 }
  0x2e   :  { %564 = vmatpush1.bf16.msra.mxu0 %v827_v28  ;;  %605 = vmatpush1.bf16.msra.mxu1 %v829_v29 }
  0x2f   :  { %859 = vmatprep.subr.msk.bf16.mxu0 %vm266_vm0, %v844_v30  ;;  %861 = vmatprep.subr.msk.bf16.mxu1 %vm266_vm0, %v846_v32 }
  0x32   :  { %566 = vmatpush1.bf16.msra.mxu0 %v304_v34  ;;  %607 = vmatpush1.bf16.msra.mxu1 %v310_v36 }
  0x35   :  { %860 = vmatmul.mubr.msk.bf16.vlgmr.msra.gmra.mrb[12].mxu0 %vm262_vm1, %v992_v35  ;;  %862 = vmatmul.mubr.msk.bf16.vlgmr.msra.gmra.mrb[12].mxu1 %vm262_vm1, %v992_v35 }
  0x87   :  { %v1097_v37 = vpop.permute.xlu0 %59 }
  0xe4   :  { %v349_v3 = vpop.f32.mrb[0].mxu0  ;;  %v390_v39 = vpop.f32.mrb[0].mxu1 }
  0xe5   :  { %v350_v38 = vadd.f32 %v349_v3, %v1097_v37  ;;  %v351_v40 = vpop.f32.mrb[1].mxu0  ;;  %v391_v41 = vadd.f32 %v390_v39, %v1097_v37  ;;  %v392_v43 = vpop.f32.mrb[1].mxu1 }
  0xe6   :  { %v352_v42 = vadd.f32 %v351_v40, %v1097_v37  ;;  %v353_v44 = vpop.f32.mrb[2].mxu0  ;;  %v393_v45 = vadd.f32 %v392_v43, %v1097_v37  ;;  %v394_v46 = vpop.f32.mrb[2].mxu1 }
  0xe7   :  { %vm647_vm2 = vcmp.ge.f32.partialorder %v350_v38, 1.0  ;;  %v354_v47 = vpop.f32.mrb[3].mxu0  ;;  %vm649_vm3 = vcmp.ge.f32.partialorder %v391_v41, 1.0  ;;  %v395_v49 = vpop.f32.mrb[3].mxu1 }
  0xe8   :  { %v863_v35 = vsel %vm647_vm2, 1.0, %v907_v48  ;;  %vm648_vm4 = vcmp.ge.f32.partialorder %v352_v42, 1.0  ;;  %v865_v50 = vsel %vm649_vm3, 1.0, %v907_v48  ;;  %vm650_vm5 = vcmp.ge.f32.partialorder %v393_v45, 1.0 }
  0xe9   :  { %659 = vst [vmem:[#allocation2] sm:$0xf] %v863_v35  ;;  %v864_v51 = vsel %vm648_vm4, 1.0, %v907_v48  ;;  %661 = vst [vmem:[#allocation2 + $0x10] sm:$0xf] %v865_v50  ;;  %v866_v52 = vsel %vm650_vm5, 1.0, %v907_v48 }
  0xea   :  { %660 = vst [vmem:[#allocation2 + $0x8] sm:$0xf] %v864_v51  ;;  %662 = vst [vmem:[#allocation2 + $0x18] sm:$0xf] %v866_v52  ;;  %v663_v57 = vsel %vm647_vm2, 0.0, %v350_v38  ;;  %v665_v62 = vsel %vm649_vm3, 0.0, %v391_v41 }
  0xeb   :  { %v664_v63 = vsel %vm648_vm4, 0.0, %v352_v42  ;;  %v666_v5 = vsel %vm650_vm5, 0.0, %v393_v45 }
  0xf0   :  { %v431_v53 = vpop.f32.mrb[4].mxu0  ;;  %v472_v55 = vpop.f32.mrb[4].mxu1 }
  0xf1   :  { %v432_v54 = vadd.f32 %v431_v53, %v1097_v37  ;;  %v433_v56 = vpop.f32.mrb[5].mxu0  ;;  %v473_v58 = vadd.f32 %v472_v55, %v1097_v37  ;;  %v474_v60 = vpop.f32.mrb[5].mxu1 }
  0xf2   :  { %v434_v59 = vadd.f32 %v433_v56, %v1097_v37  ;;  %v435_v61 = vpop.f32.mrb[6].mxu0  ;;  %v475_v1 = vadd.f32 %v474_v60, %v1097_v37  ;;  %v476_v2 = vpop.f32.mrb[6].mxu1 }
  0xf3   :  { %v667_v0 = vadd.f32 %v663_v57, %v432_v54  ;;  %v436_v4 = vpop.f32.mrb[7].mxu0  ;;  %v669_v6 = vadd.f32 %v665_v62, %v473_v58  ;;  %v477_v8 = vpop.f32.mrb[7].mxu1 }
  0xf4   :  { %v668_v7 = vadd.f32 %v664_v63, %v434_v59  ;;  %v670_v9 = vadd.f32 %v666_v5, %v475_v1 }
  0xf5   :  { %vm671_vm6 = vcmp.ge.f32.partialorder %v667_v0, 1.0  ;;  %vm673_vm7 = vcmp.ge.f32.partialorder %v669_v6, 1.0 }
  0xf6   :  { %v867_v10 = vsel %vm671_vm6, 1.0, %v907_v48  ;;  %vm672_vm8 = vcmp.ge.f32.partialorder %v668_v7, 1.0  ;;  %v869_v12 = vsel %vm673_vm7, 1.0, %v907_v48  ;;  %vm674_vm9 = vcmp.ge.f32.partialorder %v670_v9, 1.0 }
  0xf7   :  { %v687_v11 = vrot.slane %v867_v10, 4  ;;  %v868_v13 = vsel %vm672_vm8, 1.0, %v907_v48  ;;  %v689_v14 = vrot.slane %v869_v12, 4  ;;  %v870_v16 = vsel %vm674_vm9, 1.0, %v907_v48 }
  0xf8   :  { %v688_v15 = vrot.slane %v868_v13, 4  ;;  %v690_v17 = vrot.slane %v870_v16, 4  ;;  %v699_v22 = vsel %vm671_vm6, 0.0, %v667_v0  ;;  %v701_v28 = vsel %vm673_vm7, 0.0, %v669_v6 }
  0xf9   :  { %695 = vst [vmem:[#allocation2] sm:$0xf0] %v687_v11  ;;  %697 = vst [vmem:[#allocation2 + $0x10] sm:$0xf0] %v689_v14  ;;  %v700_v29 = vsel %vm672_vm8, 0.0, %v668_v7  ;;  %v702_v3 = vsel %vm674_vm9, 0.0, %v670_v9 }
  0xfa   :  { %696 = vst [vmem:[#allocation2 + $0x8] sm:$0xf0] %v688_v15  ;;  %698 = vst [vmem:[#allocation2 + $0x18] sm:$0xf0] %v690_v17 }
  0xfc   :  { %v513_v18 = vpop.f32.mrb[8].mxu0  ;;  %v554_v20 = vpop.f32.mrb[8].mxu1 }
  0xfd   :  { %v514_v19 = vadd.f32 %v513_v18, %v1097_v37  ;;  %v515_v21 = vpop.f32.mrb[9].mxu0  ;;  %v555_v23 = vadd.f32 %v554_v20, %v1097_v37  ;;  %v556_v25 = vpop.f32.mrb[9].mxu1 }
  0xfe   :  { %v516_v24 = vadd.f32 %v515_v21, %v1097_v37  ;;  %v517_v26 = vpop.f32.mrb[10].mxu0  ;;  %v557_v30 = vadd.f32 %v556_v25, %v1097_v37  ;;  %v558_v31 = vpop.f32.mrb[10].mxu1 }
  0xff   :  { %v703_v27 = vadd.f32 %v699_v22, %v514_v19  ;;  %v518_v32 = vpop.f32.mrb[11].mxu0  ;;  %v705_v34 = vadd.f32 %v701_v28, %v555_v23  ;;  %v559_v38 = vpop.f32.mrb[11].mxu1 }
 0x100   :  { %v759_v33 = vld [vmem:[#allocation2] sm:$0xff]  ;;  %v704_v36 = vadd.f32 %v700_v29, %v516_v24  ;;  %v761_v39 = vld [vmem:[#allocation2 + $0x10] sm:$0xff]  ;;  %v706_v41 = vadd.f32 %v702_v3, %v557_v30 }
 0x101   :  { %v760_v40 = vld [vmem:[#allocation2 + $0x8] sm:$0xff]  ;;  %vm707_vm10 = vcmp.ge.f32.partialorder %v703_v27, 1.0  ;;  %vm709_vm11 = vcmp.ge.f32.partialorder %v705_v34, 1.0  ;;  %v762_v44 = vld [vmem:[#allocation2 + $0x18] sm:$0xff] }
 0x102   :  { %v883_v42 = vpack.c.bf16 %v760_v40, %v759_v33  ;;  %v871_v43 = vsel %vm707_vm10, 1.0, %v907_v48  ;;  %v873_v45 = vsel %vm709_vm11, 1.0, %v907_v48  ;;  %vm708_vm12 = vcmp.ge.f32.partialorder %v704_v36, 1.0 }
 0x103   :  { %719 = vst [vmem:[#allocation2 + $0x20] sm:$0xf] %v871_v43  ;;  %vm710_vm13 = vcmp.ge.f32.partialorder %v706_v41, 1.0  ;;  %v884_v46 = vpack.c.bf16 %v762_v44, %v761_v39  ;;  %721 = vst [vmem:[#allocation2 + $0x30] sm:$0xf] %v873_v45  ;;  %v872_v47 = vsel %vm708_vm12, 1.0, %v907_v48 }
 0x104   :  { %791 = vst [vmem:[%s1170_s3] sm:$0xff] %v883_v42  ;;  %v874_v35 = vsel %vm710_vm13, 1.0, %v907_v48  ;;  %720 = vst [vmem:[#allocation2 + $0x28] sm:$0xf] %v872_v47  ;;  %v723_v53 = vsel %vm707_vm10, 0.0, %v703_v27  ;;  %v725_v59 = vsel %vm709_vm11, 0.0, %v705_v34  ;;  %v724_v60 = vsel %vm708_vm12, 0.0, %v704_v36 }
 0x105   :  { %722 = vst [vmem:[#allocation2 + $0x38] sm:$0xf] %v874_v35  ;;  %792 = vst [vmem:[%s1170_s3 + $0x8] sm:$0xff] %v884_v46  ;;  %v726_v2 = vsel %vm710_vm13, 0.0, %v706_v41 }
 0x108   :  { %v595_v49 = vpop.f32.mrb[12].mxu0  ;;  %v636_v51 = vpop.f32.mrb[12].mxu1 }
 0x109   :  { %v596_v50 = vadd.f32 %v595_v49, %v1097_v37  ;;  %v597_v52 = vpop.f32.mrb[13].mxu0  ;;  %v637_v54 = vadd.f32 %v636_v51, %v1097_v37  ;;  %v638_v56 = vpop.f32.mrb[13].mxu1 }
 0x10a   :  { %v598_v55 = vadd.f32 %v597_v52, %v1097_v37  ;;  %v599_v57 = vpop.f32.mrb[14].mxu0  ;;  %v639_v61 = vadd.f32 %v638_v56, %v1097_v37  ;;  %v640_v62 = vpop.f32.mrb[14].mxu1 }
 0x10b   :  { %v727_v58 = vadd.f32 %v723_v53, %v596_v50  ;;  %v600_v63 = vpop.f32.mrb[15].mxu0  ;;  %v729_v0 = vadd.f32 %v725_v59, %v637_v54  ;;  %v641_v4 = vpop.f32.mrb[15].mxu1 }
 0x10c   :  { %v728_v1 = vadd.f32 %v724_v60, %v598_v55  ;;  %v730_v5 = vadd.f32 %v726_v2, %v639_v61 }
 0x10d   :  { %vm731_vm14 = vcmp.ge.f32.partialorder %v727_v58, 1.0  ;;  %vm733_vm15 = vcmp.ge.f32.partialorder %v729_v0, 1.0 }
 0x10e   :  { %v875_v6 = vsel %vm731_vm14, 1.0, %v907_v48  ;;  %vm732_vm0 = vcmp.ge.f32.partialorder %v728_v1, 1.0  ;;  %v877_v8 = vsel %vm733_vm15, 1.0, %v907_v48  ;;  %vm734_vm1 = vcmp.ge.f32.partialorder %v730_v5, 1.0 }
 0x10f   :  { %v747_v7 = vrot.slane %v875_v6, 4  ;;  %v876_v9 = vsel %vm732_vm0, 1.0, %v907_v48  ;;  %v749_v37 = vrot.slane %v877_v8, 4  ;;  %v878_v11 = vsel %vm734_vm1, 1.0, %v907_v48 }
 0x110   :  { %v748_v10 = vrot.slane %v876_v9, 4  ;;  %v750_v12 = vrot.slane %v878_v11, 4 }
 0x111   :  { %755 = vst [vmem:[#allocation2 + $0x20] sm:$0xf0] %v747_v7  ;;  %757 = vst [vmem:[#allocation2 + $0x30] sm:$0xf0] %v749_v37 }
 0x112   :  { %756 = vst [vmem:[#allocation2 + $0x28] sm:$0xf0] %v748_v10  ;;  %758 = vst [vmem:[#allocation2 + $0x38] sm:$0xf0] %v750_v12 }
 0x118   :  { %v763_v13 = vld [vmem:[#allocation2 + $0x20] sm:$0xff]  ;;  %v765_v14 = vld [vmem:[#allocation2 + $0x30] sm:$0xff] }
 0x119   :  { %v764_v15 = vld [vmem:[#allocation2 + $0x28] sm:$0xff]  ;;  %v766_v17 = vld [vmem:[#allocation2 + $0x38] sm:$0xff] }
 0x11a   :  { %v885_v16 = vpack.c.bf16 %v764_v15, %v763_v13  ;;  %v886_v18 = vpack.c.bf16 %v766_v17, %v765_v14 }
 0x11c   :  { %793 = vst [vmem:[%s1170_s3 + $0x10] sm:$0xff] %v885_v16  ;;  %794 = vst [vmem:[%s1170_s3 + $0x18] sm:$0xff] %v886_v18 }

// kernel: csnn_forward.5
= control target key start
LH: loop header
LB: loop body
LE: loop exit
PB: predicated region body
PF: predicated region fallthrough
CT: control target
= control target key end

     0   :  { %v592_v1 = vmov 0   ;;  %v593_v3 = vmov 0.0   ;;  %vm123_vm0 = vcmask 556032   ;;  %s736_s0 = inlined_call_operand.vmem [shape: bf16[8,196], index: 0, kind: input, shape index: {}]   ;;  %s737_s1 = inlined_call_operand.vmem [shape: bf16[196,64], index: 1, kind: input, shape index: {}]   ;;  %s738_s2 = inlined_call_operand.vmem [shape: bf16[64,10], index: 2, kind: input, shape index: {}]   ;;  %s739_s3 = inlined_call_operand.hbm [shape: f32[2,10], index: 3, kind: output, shape index: {}]  }
   0x1   :  { %v549_v0 = vld [vmem:[%s737_s1] sm:$0xff]   ;;  %131 = vmatprep.subr.bf16.mxu0 %v592_v1  ;;  %v550_v2 = vld [vmem:[%s737_s1 + $0x8] sm:$0xff]   ;;  %497 = vmatprep.subr.bf16.mxu1 %v593_v3  ;;  %v551_v4 = vld [vmem:[%s737_s1 + $0x10] sm:$0xff]  }
   0x2   :  { %132 = vmatpush1.bf16.msra.mxu0 %v549_v0  ;;  %v552_v5 = vld [vmem:[%s737_s1 + $0x18] sm:$0xff]   ;;  %v16_v6 = vld [vmem:[%s736_s0] sm:$0xff]  ;;  %v643_v10 = vld [vmem:[%s738_s2 + $0x8] sm:$0xff]  }
   0x3   :  { %133 = vmatprep.subr.bf16.mxu0 %v592_v1  ;;  %v446_v7 = vcombine.high %v16_v6, %v16_v6  ;;  %v635_v8 = vld [vmem:[%s738_s2] sm:$0xff]  }
   0x4   :  { %v553_v9 = vld [vmem:[%s737_s1 + $0x20] sm:$0xff]   ;;  %498 = vmatpush3.bf16.msra.mxu1 %v635_v8 }
   0x5   :  { %460 = vmatprep.mubr.msk.bf16.mxu0 %vm123_vm0, %v446_v7 }
   0x6   :  { %134 = vmatpush1.bf16.msra.mxu0 %v550_v2 }
   0x7   :  { %135 = vmatprep.subr.bf16.mxu0 %v592_v1 }
   0xa   :  { %136 = vmatpush1.bf16.msra.mxu0 %v551_v4 }
   0xb   :  { %137 = vmatprep.subr.bf16.mxu0 %v592_v1 }
   0xe   :  { %138 = vmatpush1.bf16.msra.mxu0 %v552_v5 }
   0xf   :  { %139 = vmatprep.subr.bf16.mxu0 %v592_v1 }
  0x10   :  { %8 = vsyncpa [#allocation3], 0  ;;  %499 = vmatprep.subr.bf16.mxu1 %v593_v3  ;;  %v554_v11 = vld [vmem:[%s737_s1 + $0x28] sm:$0xff]   ;;  %v654_v12 = vld [vmem:[%s738_s2 + $0x10] sm:$0xff]   ;;  %vm127_vm1 = vcmask 1041408   ;;  %v445_v21 = vcombine.low %v16_v6, %v16_v6  ;;  %vm594_vm2 = vmmov 0  }
  0x11   :  { %500 = vmatpush3.bf16.msra.mxu1 %v643_v10  ;;  %v555_v13 = vld [vmem:[%s737_s1 + $0x30] sm:$0xff]   ;;  %v556_v14 = vld [vmem:[%s737_s1 + $0x38] sm:$0xff]   ;;  %v557_v15 = vld [vmem:[%s737_s1 + $0x40] sm:$0xff]   ;;  %505 = vmatprep.mubr.msk.bf16.mxu1 %vm594_vm2, %v593_v3  ;;  %vm209_vm4 = vcmask 523264   ;;  %vm429_vm12 = vcmask 74752  }
  0x12   :  { %140 = vmatpush1.bf16.msra.mxu0 %v553_v9  ;;  %501 = vmatprep.subr.bf16.mxu1 %v593_v3  ;;  %v558_v16 = vld [vmem:[%s737_s1 + $0x48] sm:$0xff]   ;;  %v559_v17 = vld [vmem:[%s737_s1 + $0x50] sm:$0xff]   ;;  %v560_v18 = vld [vmem:[%s737_s1 + $0x58] sm:$0xff]  }
  0x13   :  { %141 = vmatprep.subr.bf16.mxu0 %v592_v1  ;;  %v561_v19 = vld [vmem:[%s737_s1 + $0x60] ss:$0 sps:$4 sm:$0x33]   ;;  %v567_v22 = vld [vmem:[%s738_s2 + $0x18] sm:$0xff]   ;;  %s595_s1 = smov [#allocation2]  }
  0x14   :  { %v129_v20 = vsel %vm127_vm1, %v561_v19, 0  ;;  %s437_s2 = sshll.u32 %s595_s1, 4  ;;  %s438_s2 = int_to_ptr.vmem [resolvable:$true] %s437_s2 }
  0x15   :  { %502 = vmatpush3.bf16.msra.mxu1 %v654_v12  ;;  %s568_s20 = scalar_lea.vmem %s438_s2, 32  ;;  %p573_p1 = scmp.lt.s32.totalorder %s438_s2, %s438_s2 }
  0x16   :  { %142 = vmatpush1.bf16.msra.mxu0 %v554_v11  ;;  %503 = vmatprep.subr.bf16.mxu1 %v593_v3  ;;  %p569_p0 = scmp.ne.s32.totalorder %s438_s2, %s568_s20  ;;  %p574_p2 = scmp.lt.s32.totalorder %s568_s20, %s568_s20 }
  0x17   :  { %143 = vmatprep.subr.bf16.mxu0 %v592_v1 }
  0x18   :  { %p575_p3 = por %p574_p2, %p573_p1 }
  0x19   :  { %504 = vmatpush3.bf16.msra.mxu1 %v567_v22 }
  0x1a   :  { %144 = vmatpush1.bf16.msra.mxu0 %v555_v13  ;;  %509 = vmatprep.subr.bf16.mxu1 %v593_v3  ;;  %p576_p4 = pnand %p575_p3, %p569_p0 }
  0x1b   :  { %145 = vmatprep.subr.bf16.mxu0 %v592_v1 }
  0x1e   :  { %146 = vmatpush1.bf16.msra.mxu0 %v556_v14 }
  0x1f   :  { %147 = vmatprep.subr.bf16.mxu0 %v592_v1 }
  0x22   :  { %148 = vmatpush1.bf16.msra.mxu0 %v557_v15 }
  0x23   :  { %149 = vmatprep.subr.bf16.mxu0 %v592_v1 }
  0x26   :  { %150 = vmatpush1.bf16.msra.mxu0 %v558_v16 }
  0x27   :  { %151 = vmatprep.subr.bf16.mxu0 %v592_v1 }
  0x2a   :  { %152 = vmatpush1.bf16.msra.mxu0 %v559_v17 }
  0x2b   :  { %153 = vmatprep.subr.bf16.mxu0 %v592_v1 }
  0x2e   :  { %154 = vmatpush1.bf16.msra.mxu0 %v560_v18 }
  0x2f   :  { %155 = vmatprep.subr.bf16.mxu0 %v592_v1 }
  0x32   :  { %156 = vmatpush1.bf16.msra.mxu0 %v129_v20 }
  0x35   :  { %164 = vmatmul.mubr.bf16.vlgmr.msra.gmra.mrb[0].mxu0 %v445_v21 }
 0x108   :  { %v165_v23 = vpop.f32.mrb[0].mxu0 }
 0x109   :  { %vm172_vm3 = vcmp.ge.f32.partialorder %v165_v23, 1.0  ;;  %v167_v24 = vpop.f32.mrb[1].mxu0  ;;  %v259_v29 = vrot.slane %v165_v23, 2  ;;  %v316_v35 = vrot.slane %v165_v23, 4  ;;  %v373_v40 = vrot.slane %v165_v23, 6 }
 0x10a   :  { %v168_v25 = vpop.f32.mrb[2].mxu0  ;;  %v461_v26 = vsel %vm172_vm3, 1.0, %v593_v3  ;;  %v173_v30 = vsel %vm172_vm3, 0.0, %v165_v23 }
 0x10b   :  { %v169_v27 = vpop.f32.mrb[3].mxu0  ;;  %v176_v28 = vpack.c.bf16 %v461_v26, %v461_v26  ;;  %v261_v31 = vadd.f32 %v259_v29, %v173_v30 }
 0x10d   :  { %506 = vmatmul.mubr.msk.bf16.vlgmr.msra.gmra.mrb[0].mxu1 %vm209_vm4, %v176_v28  ;;  %vm262_vm5 = vcmp.ge.f32.partialorder %v261_v31, 1.0 }
 0x10e   :  { %510 = vmatpush3.bf16.msra.mxu1 %v635_v8  ;;  %517 = vmatprep.mubr.msk.bf16.mxu1 %vm594_vm2, %v593_v3  ;;  %v468_v32 = vsel %vm262_vm5, 1.0, %v593_v3  ;;  %v263_v34 = vsel %vm262_vm5, 0.0, %v261_v31 }
 0x10f   :  { %511 = vmatprep.subr.bf16.mxu1 %v593_v3  ;;  %v266_v33 = vpack.c.bf16 %v468_v32, %v468_v32  ;;  %v318_v36 = vadd.f32 %v316_v35, %v263_v34 }
 0x111   :  { %vm319_vm6 = vcmp.ge.f32.partialorder %v318_v36, 1.0 }
 0x112   :  { %512 = vmatpush3.bf16.msra.mxu1 %v643_v10  ;;  %v471_v37 = vsel %vm319_vm6, 1.0, %v593_v3  ;;  %v320_v39 = vsel %vm319_vm6, 0.0, %v318_v36 }
 0x113   :  { %513 = vmatprep.subr.bf16.mxu1 %v593_v3  ;;  %v323_v38 = vpack.c.bf16 %v471_v37, %v471_v37  ;;  %v375_v41 = vadd.f32 %v373_v40, %v320_v39 }
 0x115   :  { %vm376_vm7 = vcmp.ge.f32.partialorder %v375_v41, 1.0 }
 0x116   :  { %514 = vmatpush3.bf16.msra.mxu1 %v654_v12  ;;  %v474_v42 = vsel %vm376_vm7, 1.0, %v593_v3 }
 0x117   :  { %515 = vmatprep.subr.bf16.mxu1 %v593_v3  ;;  %v379_v43 = vpack.c.bf16 %v474_v42, %v474_v42 }
 0x11a   :  { %516 = vmatpush3.bf16.msra.mxu1 %v567_v22 }
 0x11b   :  { %521 = vmatprep.subr.bf16.mxu1 %v593_v3 }
 0x11d   :  { %518 = vmatmul.mubr.msk.bf16.vlgmr.msra.gmra.mrb[4].mxu1 %vm209_vm4, %v266_v33 }
 0x11e   :  { %522 = vmatpush3.bf16.msra.mxu1 %v635_v8  ;;  %529 = vmatprep.mubr.msk.bf16.mxu1 %vm594_vm2, %v593_v3 }
 0x11f   :  { %523 = vmatprep.subr.bf16.mxu1 %v593_v3 }
 0x122   :  { %524 = vmatpush3.bf16.msra.mxu1 %v643_v10 }
 0x123   :  { %525 = vmatprep.subr.bf16.mxu1 %v593_v3 }
 0x126   :  { %526 = vmatpush3.bf16.msra.mxu1 %v654_v12 }
 0x127   :  { %527 = vmatprep.subr.bf16.mxu1 %v593_v3 }
 0x12a   :  { %528 = vmatpush3.bf16.msra.mxu1 %v567_v22 }
 0x12b   :  { %533 = vmatprep.subr.bf16.mxu1 %v593_v3 }
 0x12d   :  { %530 = vmatmul.mubr.msk.bf16.vlgmr.msra.gmra.mrb[8].mxu1 %vm209_vm4, %v323_v38 }
 0x12e   :  { %534 = vmatpush3.bf16.msra.mxu1 %v635_v8  ;;  %541 = vmatprep.mubr.msk.bf16.mxu1 %vm594_vm2, %v593_v3 }
 0x12f   :  { %535 = vmatprep.subr.bf16.mxu1 %v593_v3 }
 0x132   :  { %536 = vmatpush3.bf16.msra.mxu1 %v643_v10 }
 0x133   :  { %537 = vmatprep.subr.bf16.mxu1 %v593_v3 }
 0x136   :  { %538 = vmatpush3.bf16.msra.mxu1 %v654_v12 }
 0x137   :  { %539 = vmatprep.subr.bf16.mxu1 %v593_v3 }
 0x13a   :  { %540 = vmatpush3.bf16.msra.mxu1 %v567_v22 }
 0x13d   :  { %542 = vmatmul.mubr.msk.bf16.vlgmr.msra.gmra.mrb[12].mxu1 %vm209_vm4, %v379_v43 }
 0x1e0   :  { %v247_v44 = vpop.f32.mrb[0].mxu1 }
 0x1e1   :  { %v507_v45 = vpop.f32.mrb[1].mxu1  ;;  %vm253_vm8 = vcmp.ge.f32.partialorder %v247_v44, 1.0 }
 0x1e2   :  { %v250_v46 = vpop.f32.mrb[2].mxu1  ;;  %v254_v48 = vsel %vm253_vm8, 0.0, %v247_v44  ;;  %v467_v54 = vsel %vm253_vm8, 1.0, %v593_v3 }
 0x1e3   :  { %v508_v47 = vpop.f32.mrb[3].mxu1 }
 0x1f0   :  { %v304_v49 = vpop.f32.mrb[4].mxu1 }
 0x1f1   :  { %v310_v50 = vadd.f32 %v304_v49, %v254_v48  ;;  %v519_v51 = vpop.f32.mrb[5].mxu1 }
 0x1f2   :  { %v307_v52 = vpop.f32.mrb[6].mxu1 }
 0x1f3   :  { %v520_v53 = vpop.f32.mrb[7].mxu1  ;;  %vm311_vm9 = vcmp.ge.f32.partialorder %v310_v50, 1.0 }
 0x1f4   :  { %v470_v55 = vsel %vm311_vm9, 1.0, %v593_v3  ;;  %v312_v57 = vsel %vm311_vm9, 0.0, %v310_v50 }
 0x1f5   :  { %v315_v56 = vadd.f32 %v470_v55, %v467_v54 }
 0x200   :  { %v361_v58 = vpop.f32.mrb[8].mxu1 }
 0x201   :  { %v367_v59 = vadd.f32 %v361_v58, %v312_v57  ;;  %v531_v60 = vpop.f32.mrb[9].mxu1 }
 0x202   :  { %v364_v61 = vpop.f32.mrb[10].mxu1 }
 0x203   :  { %v532_v62 = vpop.f32.mrb[11].mxu1  ;;  %vm368_vm10 = vcmp.ge.f32.partialorder %v367_v59, 1.0 }
 0x204   :  { %v473_v63 = vsel %vm368_vm10, 1.0, %v593_v3  ;;  %v369_v1 = vsel %vm368_vm10, 0.0, %v367_v59 }
 0x205   :  { %v372_v0 = vadd.f32 %v473_v63, %v315_v56 }
 0x210   :  { %v417_v2 = vpop.f32.mrb[12].mxu1 }
 0x211   :  { %v423_v4 = vadd.f32 %v417_v2, %v369_v1  ;;  %v543_v5 = vpop.f32.mrb[13].mxu1 }
 0x212   :  { %v420_v6 = vpop.f32.mrb[14].mxu1 }
 0x213   :  { %vm424_vm11 = vcmp.ge.f32.partialorder %v423_v4, 1.0  ;;  %v544_v7 = vpop.f32.mrb[15].mxu1 }
 0x214   :  { %v476_v8 = vsel %vm424_vm11, 1.0, %v593_v3 }
 0x215   :  { %v427_v9 = vadd.f32 %v476_v8, %v372_v0 }
 0x217   :  { %v428_v10 = vmul.f32 0.25, %v427_v9 }
 0x219   :  { %430 = vst.msk [vmem:[#allocation2] sm:$0x3] %vm429_vm12, %v428_v10 }
 0x21a   :  { %579 = shalt.err (!%p576_p4)
}
 0x21b   :  { %s580_s23 = scalar_lea.hbm %s739_s3, 32 }
 0x21c   :  { %p581_p5 = scmp.ne.s32.totalorder %s739_s3, %s580_s23  ;;  %p584_p6 = scmp.lt.u32.totalorder %s580_s23, %s739_s3 }
 0x21e   :  { %p586_p7 = pnand %p584_p6, %p581_p5 }
 0x220   :  { %589 = shalt.err (!%p586_p7)
}
 0x221   :  { %440 = dma.vmem_to_hbm [thread:$0]  %s438_s2, 32, %s739_s3, [#allocation3]  }
 0x222   :  { %590 = dma.done.wait [#allocation3], 32  }
 0x223   :  { %591 = vsyncadd [#allocation3], 4294967264 }
 0x224   :  { %444 = vsyncpa [#allocation3], 1 }

</bundles_post_ra>
